<compile_context>
chip_gen: v7x
topology: tpu7x:2x2x1
jax: 0.10.0
libtpu: 0.0.40
codegen_flags: <defaults>
</compile_context>

<pallas_src>
import jax
import jax.numpy as jnp
from jax.experimental import pallas as pl
from jax.experimental.pallas import tpu as pltpu

# ---------------- configuration (small, consistent with the forward) ----------
B, C_IN, H, W = 2, 4, 16, 16
C_HM, C_GD, C_REG = 3, 1, 2
C_OUT = C_HM + C_GD + C_REG
K_OBJ = 8
O_SIZE = 512            # hard-coded in the reference forward: interpolate to [512, 512]
TILE_O = 128            # rows of the upsampled map processed per grid step

VMEM = pltpu.MemorySpace.VMEM
SMEM = pltpu.MemorySpace.SMEM


# ================================ kernels ====================================
def _head_focal_reg_kernel(xT_ref, wT_ref, bT_ref, gt_ref, find_ref, mask_ref,
                           rtgt_ref, gd_ref, stats_ref):
    """Fused 1x1-conv head + focal loss + masked reg L1.

    Layout: channel-major, lane-dense.
      xT    : (C_IN,  B*H*W)       wT : (C_OUT, C_IN)      bT : (C_OUT, 1)
      gt    : (C_HM,  B*H*W)       find/mask : (1, B*K)    rtgt : (C_REG, B*K)
      gd out: (C_GD,  B*H*W)       stats out : (5,) SMEM  [pos, neg, npos, l1sum, msum]
    """
    # ---- synthetic net: 1x1 conv == (C_OUT, C_IN) @ (C_IN, B*H*W) on the MXU ----
    out_T = jnp.dot(wT_ref[...], xT_ref[...],
                    preferred_element_type=jnp.float32) + bT_ref[...]   # (C_OUT, N)

    # ---- _sigmoid + modified focal loss on the hm channels (lane-dense) ----
    hm = out_T[:C_HM, :]                                                # (C_HM, N)
    pred = jnp.clip(jax.nn.sigmoid(hm), 1e-4, 1.0 - 1e-4)
    gt = gt_ref[...]
    pos_inds = (gt == 1.0).astype(jnp.float32)
    neg_inds = (gt < 1.0).astype(jnp.float32)
    neg_w = (1.0 - gt) ** 4
    pos_l = jnp.log(pred) * (1.0 - pred) ** 2 * pos_inds
    neg_l = jnp.log(1.0 - pred) * pred ** 2 * neg_w * neg_inds
    stats_ref[0] = jnp.sum(pos_l)
    stats_ref[1] = jnp.sum(neg_l)
    stats_ref[2] = jnp.sum(pos_inds)

    # ---- 'gd' channel, forwarded to the resize kernel (lane-dense 1x512 write) ----
    gd_ref[...] = out_T[C_HM:C_HM + C_GD, :]

    # ---- RegL1Loss: _transpose_and_gather_feat as one small NN matmul gather ----
    regT = out_T[C_HM + C_GD:, :]                                       # (C_REG, N)
    n_tot = regT.shape[1]
    n_obj = find_ref.shape[1]
    iota = jax.lax.broadcasted_iota(jnp.int32, (n_tot, n_obj), 0)       # (N, B*K)
    onehotT = (iota == find_ref[...]).astype(jnp.float32)               # (N, B*K)
    pred_r = jnp.dot(regT, onehotT,
                     preferred_element_type=jnp.float32)                # (C_REG, B*K)
    m = mask_ref[...]                                                   # (1, B*K)
    l1 = jnp.abs(pred_r * m - rtgt_ref[...] * m)
    stats_ref[3] = jnp.sum(l1)
    stats_ref[4] = jnp.sum(m) * regT.shape[0]   # mask expanded over C_REG


def _resize_smoothl1_kernel(gd_ref, wy_ref, wxt_ref, tgt_ref, out_ref):
    """Bilinear resize (align_corners=True) expressed as Wy_tile @ (x @ WxT),
    fused with a SmoothL1 partial reduction, accumulated per (b, c) over the
    tiled output-row axis."""
    o = pl.program_id(2)

    @pl.when(o == 0)
    def _():
        out_ref[...] = jnp.zeros_like(out_ref)

    x = gd_ref[0, 0]                                                        # (H, W)
    # Reordered matmuls: lane-dense (H, O) intermediate instead of (O, H).
    tmp = jnp.dot(x, wxt_ref[...], preferred_element_type=jnp.float32)      # (H, O)
    up = jnp.dot(wy_ref[...], tmp, preferred_element_type=jnp.float32)      # (TO, O)

    d = up - tgt_ref[0, 0]
    ad = jnp.abs(d)
    sl = jnp.where(ad < 1.0, 0.5 * d * d, ad - 0.5)                          # (TO, O)

    # Layout-friendly partial reduction to one (8, 128) vreg (pure vector adds):
    #   fold lane groups O -> 128 by aligned slicing, then sublane groups TO -> 8.
    acc = sl[:, 0:128]
    for j in range(1, sl.shape[1] // 128):
        acc = acc + sl[:, j * 128:(j + 1) * 128]                             # (TO, 128)
    part = jnp.sum(acc.reshape(acc.shape[0] // 8, 8, 128), axis=0)           # (8, 128)
    out_ref[0, 0] += part


# ================================ wrappers ===================================
def head_focal_reg(xT, wT, bT, gtT, find, maskf, rtgtT):
    gd_flat, stats = pl.pallas_call(
        _head_focal_reg_kernel,
        out_shape=(jax.ShapeDtypeStruct((C_GD, xT.shape[1]), jnp.float32),
                   jax.ShapeDtypeStruct((5,), jnp.float32)),
        in_specs=[pl.BlockSpec(memory_space=VMEM)] * 7,
        out_specs=(pl.BlockSpec(memory_space=VMEM),
                   pl.BlockSpec(memory_space=SMEM)),
    )(xT, wT, bT, gtT, find, maskf, rtgtT)

    pos, neg, npos, lsum, msum = stats[0], stats[1], stats[2], stats[3], stats[4]
    safe_npos = jnp.maximum(npos, 1.0)            # avoid 0/0 (and NaN through grad)
    hm_loss = jnp.where(npos == 0, -neg, -(pos + neg) / safe_npos)
    off_loss = lsum / (msum + 1e-4)
    return hm_loss, off_loss, gd_flat


def resize_smooth_l1(gd_nchw, wy, wx_t, grad_target_nchw):
    Bn, Cg, Hn, Wn = gd_nchw.shape
    O = grad_target_nchw.shape[-1]
    partial = pl.pallas_call(
        _resize_smoothl1_kernel,
        out_shape=jax.ShapeDtypeStruct((Bn, Cg, 8, 128), jnp.float32),
        grid=(Bn, Cg, O // TILE_O),
        in_specs=[
            pl.BlockSpec((1, 1, Hn, Wn), lambda b, c, o: (b, c, 0, 0)),  # gd tile
            pl.BlockSpec((TILE_O, Hn), lambda b, c, o: (o, 0)),          # Wy rows
            pl.BlockSpec(memory_space=VMEM),                             # WxT resident
            pl.BlockSpec((1, 1, TILE_O, O), lambda b, c, o: (b, c, o, 0)),  # target rows
        ],
        out_specs=pl.BlockSpec((1, 1, 8, 128), lambda b, c, o: (b, c, 0, 0)),
        compiler_params=pltpu.CompilerParams(
            dimension_semantics=("parallel", "parallel", "arbitrary")),
    )(gd_nchw, wy, wx_t, grad_target_nchw)
    # SmoothL1Loss mean reduction
    return jnp.sum(partial) / (Bn * Cg * O * O)


# ================================ glue =======================================
def bilinear_matrix_align_corners(out_size, in_size):
    """Row-interpolation matrix M such that M @ x == 1-D bilinear resize
    (align_corners=True, matching the reference's F.interpolate call)."""
    o = jnp.arange(out_size, dtype=jnp.float32)
    s = o * (in_size - 1) / (out_size - 1)
    i0 = jnp.clip(jnp.floor(s).astype(jnp.int32), 0, in_size - 2)
    w1 = s - i0.astype(jnp.float32)
    w0 = 1.0 - w1
    rows = jnp.arange(out_size)
    m = jnp.zeros((out_size, in_size), jnp.float32)
    m = m.at[rows, i0].add(w0)
    m = m.at[rows, i0 + 1].add(w1)
    return m


def ctdet_loss(imgs, batch, params):
    Bn, Cin, Hn, Wn = imgs.shape
    HW = Hn * Wn

    # ---- tiny XLA-side layout prep (channel-major, lane-dense kernel inputs) ----
    xT = imgs.reshape(Bn, Cin, HW).transpose(1, 0, 2).reshape(Cin, Bn * HW)
    gtT = batch['hm'].transpose(1, 0, 2, 3).reshape(C_HM, Bn * HW)
    find = (batch['ind'].astype(jnp.int32)
            + jnp.arange(Bn, dtype=jnp.int32)[:, None] * HW).reshape(1, Bn * K_OBJ)
    maskf = batch['reg_mask'].astype(jnp.float32).reshape(1, Bn * K_OBJ)
    rtgtT = batch['reg'].transpose(2, 0, 1).reshape(C_REG, Bn * K_OBJ)

    # ---- fused head + FocalLoss + RegL1Loss (single pallas_call) ----
    hm_loss, off_loss, gd_flat = head_focal_reg(
        xT, params['wT'], params['bT'], gtT, find, maskf, rtgtT)

    # ---- bilinear resize to 512x512 + SmoothL1 ----
    gd_nchw = gd_flat.reshape(C_GD, Bn, Hn, Wn).transpose(1, 0, 2, 3)
    gd_loss = resize_smooth_l1(gd_nchw, params['wy'], params['wx_t'],
                               batch['grad'].astype(jnp.float32))

    loss = hm_loss + 1.0 * gd_loss + off_loss
    loss_stats = {'loss': loss, 'hm_loss': hm_loss,
                  'wh_loss': gd_loss, 'off_loss': off_loss}
    return loss, loss_stats


if __name__ == "__main__":
    key = jax.random.PRNGKey(0)
    k1, k2, k3, k4, k5, k6, k7 = jax.random.split(key, 7)

    imgs = jax.random.normal(k1, (B, C_IN, H, W), jnp.float32)

    # deterministic synthetic net parameters (1x1-conv head)
    w = jax.random.normal(k2, (C_IN, C_OUT), jnp.float32) * 0.1
    params = {
        'wT': w.T,                                     # (C_OUT, C_IN)
        'bT': jnp.zeros((C_OUT, 1), jnp.float32),      # (C_OUT, 1)
        'wy': bilinear_matrix_align_corners(O_SIZE, H),       # (O, H)
        'wx_t': bilinear_matrix_align_corners(O_SIZE, W).T,   # (W, O)
    }

    # ground-truth batch in the reference NCHW convention
    hm_gt = jax.random.uniform(k3, (B, C_HM, H, W), jnp.float32, 0.0, 0.9)
    hm_gt = hm_gt.at[0, 0, 3, 5].set(1.0).at[0, 1, 9, 12].set(1.0)
    hm_gt = hm_gt.at[1, 2, 7, 7].set(1.0)

    batch = {
        'hm': hm_gt,
        'grad': jax.random.normal(k4, (B, C_GD, O_SIZE, O_SIZE), jnp.float32),
        'ind': jax.random.randint(k5, (B, K_OBJ), 0, H * W, jnp.int32),
        'reg_mask': (jax.random.uniform(k6, (B, K_OBJ)) > 0.3).astype(jnp.float32),
        'reg': jax.random.uniform(k7, (B, K_OBJ, C_REG), jnp.float32),
    }

    loss, stats = jax.jit(ctdet_loss)(imgs, batch, params)
    jax.block_until_ready((loss, stats))
    print("KERNEL_OK")
</pallas_src>

<mosaic_0001>
module attributes {stable_mosaic.version = 11 : i64} {
  func.func @_head_focal_reg_kernel(%arg0: memref<4x512xf32, #tpu.memory_space<vmem>>, %arg1: memref<6x4xf32, #tpu.memory_space<vmem>>, %arg2: memref<6x1xf32, #tpu.memory_space<vmem>>, %arg3: memref<3x512xf32, #tpu.memory_space<vmem>>, %arg4: memref<1x16xi32, #tpu.memory_space<vmem>>, %arg5: memref<1x16xf32, #tpu.memory_space<vmem>>, %arg6: memref<2x16xf32, #tpu.memory_space<vmem>>, %arg7: memref<1x512xf32, #tpu.memory_space<vmem>>, %arg8: memref<5xf32, #tpu.memory_space<smem>>) attributes {dimension_semantics = [], scalar_prefetch = 0 : i64, scratch_operands = 0 : i64, tpu.core_type = #tpu.core_type<tc>} {
    %c0 = arith.constant 0 : index
    %c0_0 = arith.constant 0 : index
    %0 = vector.load %arg1[%c0, %c0_0] : memref<6x4xf32, #tpu.memory_space<vmem>>, vector<6x4xf32>
    %c0_1 = arith.constant 0 : index
    %c0_2 = arith.constant 0 : index
    %1 = vector.load %arg0[%c0_1, %c0_2] : memref<4x512xf32, #tpu.memory_space<vmem>>, vector<4x512xf32>
    %cst = arith.constant dense<0.000000e+00> : vector<6x512xf32>
    %2 = tpu.matmul %0, %1, %cst {dimension_numbers = #tpu.dot_dimension_numbers<[1], [0], [0], [1], [0, 0, 1, 1], [], []>} : vector<6x4xf32>, vector<4x512xf32>, vector<6x512xf32> -> vector<6x512xf32>
    %c0_3 = arith.constant 0 : index
    %c0_4 = arith.constant 0 : index
    %3 = vector.load %arg2[%c0_3, %c0_4] : memref<6x1xf32, #tpu.memory_space<vmem>>, vector<6x1xf32>
    %4 = vector.broadcast %3 : vector<6x1xf32> to vector<6x512xf32>
    %5 = arith.addf %2, %4 : vector<6x512xf32>
    %6 = vector.extract_strided_slice %5 {offsets = [0, 0], sizes = [3, 512], strides = [1, 1]} : vector<6x512xf32> to vector<3x512xf32>
    %7 = arith.negf %6 : vector<3x512xf32>
    %8 = math.exp %7 : vector<3x512xf32>
    %cst_5 = arith.constant 1.000000e+00 : f32
    %9 = vector.broadcast %cst_5 : f32 to vector<3x512xf32>
    %10 = arith.addf %9, %8 : vector<3x512xf32>
    %11 = arith.divf %9, %10 : vector<3x512xf32>
    %cst_6 = arith.constant 9.99999974E-5 : f32
    %cst_7 = arith.constant 0.999899983 : f32
    %12 = vector.broadcast %cst_6 : f32 to vector<3x512xf32>
    %13 = arith.maximumf %12, %11 : vector<3x512xf32>
    %14 = vector.broadcast %cst_7 : f32 to vector<3x512xf32>
    %15 = arith.minimumf %14, %13 : vector<3x512xf32>
    %c0_8 = arith.constant 0 : index
    %c0_9 = arith.constant 0 : index
    %16 = vector.load %arg3[%c0_8, %c0_9] : memref<3x512xf32, #tpu.memory_space<vmem>>, vector<3x512xf32>
    %cst_10 = arith.constant 1.000000e+00 : f32
    %17 = vector.broadcast %cst_10 : f32 to vector<3x512xf32>
    %18 = arith.cmpf oeq, %16, %17 : vector<3x512xf32>
    %19 = arith.extui %18 : vector<3x512xi1> to vector<3x512xi32>
    %20 = arith.sitofp %19 : vector<3x512xi32> to vector<3x512xf32>
    %cst_11 = arith.constant 1.000000e+00 : f32
    %21 = vector.broadcast %cst_11 : f32 to vector<3x512xf32>
    %22 = arith.cmpf olt, %16, %21 : vector<3x512xf32>
    %23 = arith.extui %22 : vector<3x512xi1> to vector<3x512xi32>
    %24 = arith.sitofp %23 : vector<3x512xi32> to vector<3x512xf32>
    %cst_12 = arith.constant 1.000000e+00 : f32
    %25 = vector.broadcast %cst_12 : f32 to vector<3x512xf32>
    %26 = arith.subf %25, %16 : vector<3x512xf32>
    %27 = arith.mulf %26, %26 : vector<3x512xf32>
    %28 = arith.mulf %27, %27 : vector<3x512xf32>
    %29 = math.log %15 : vector<3x512xf32>
    %cst_13 = arith.constant 1.000000e+00 : f32
    %30 = vector.broadcast %cst_13 : f32 to vector<3x512xf32>
    %31 = arith.subf %30, %15 : vector<3x512xf32>
    %32 = arith.mulf %31, %31 : vector<3x512xf32>
    %33 = arith.mulf %29, %32 : vector<3x512xf32>
    %34 = arith.mulf %33, %20 : vector<3x512xf32>
    %cst_14 = arith.constant 1.000000e+00 : f32
    %35 = vector.broadcast %cst_14 : f32 to vector<3x512xf32>
    %36 = arith.subf %35, %15 : vector<3x512xf32>
    %37 = math.log %36 : vector<3x512xf32>
    %38 = arith.mulf %15, %15 : vector<3x512xf32>
    %39 = arith.mulf %37, %38 : vector<3x512xf32>
    %40 = arith.mulf %39, %28 : vector<3x512xf32>
    %41 = arith.mulf %40, %24 : vector<3x512xf32>
    %42 = vector.shape_cast %34 : vector<3x512xf32> to vector<1x3x512xf32>
    %cst_15 = arith.constant dense<0.000000e+00> : vector<1xf32>
    %43 = vector.multi_reduction <add>, %42, %cst_15 [1, 2] : vector<1x3x512xf32> to vector<1xf32>
    %44 = vector.shape_cast %43 : vector<1xf32> to vector<1x1x1xf32>
    %45 = vector.extract %44[0, 0, 0] : f32 from vector<1x1x1xf32>
    %c0_16 = arith.constant 0 : index
    %46 = memref.load %arg8[%c0_16] : memref<5xf32, #tpu.memory_space<smem>>
    memref.store %45, %arg8[%c0_16] : memref<5xf32, #tpu.memory_space<smem>>
    %47 = vector.shape_cast %41 : vector<3x512xf32> to vector<1x3x512xf32>
    %cst_17 = arith.constant dense<0.000000e+00> : vector<1xf32>
    %48 = vector.multi_reduction <add>, %47, %cst_17 [1, 2] : vector<1x3x512xf32> to vector<1xf32>
    %49 = vector.shape_cast %48 : vector<1xf32> to vector<1x1x1xf32>
    %50 = vector.extract %49[0, 0, 0] : f32 from vector<1x1x1xf32>
    %c1 = arith.constant 1 : index
    %51 = memref.load %arg8[%c1] : memref<5xf32, #tpu.memory_space<smem>>
    memref.store %50, %arg8[%c1] : memref<5xf32, #tpu.memory_space<smem>>
    %52 = vector.shape_cast %20 : vector<3x512xf32> to vector<1x3x512xf32>
    %cst_18 = arith.constant dense<0.000000e+00> : vector<1xf32>
    %53 = vector.multi_reduction <add>, %52, %cst_18 [1, 2] : vector<1x3x512xf32> to vector<1xf32>
    %54 = vector.shape_cast %53 : vector<1xf32> to vector<1x1x1xf32>
    %55 = vector.extract %54[0, 0, 0] : f32 from vector<1x1x1xf32>
    %c2 = arith.constant 2 : index
    %56 = memref.load %arg8[%c2] : memref<5xf32, #tpu.memory_space<smem>>
    memref.store %55, %arg8[%c2] : memref<5xf32, #tpu.memory_space<smem>>
    %57 = vector.extract_strided_slice %5 {offsets = [3, 0], sizes = [1, 512], strides = [1, 1]} : vector<6x512xf32> to vector<1x512xf32>
    %c0_19 = arith.constant 0 : index
    %c0_20 = arith.constant 0 : index
    %58 = vector.load %arg7[%c0_19, %c0_20] : memref<1x512xf32, #tpu.memory_space<vmem>>, vector<1x512xf32>
    tpu.vector_store %arg7[%c0_19, %c0_20], %57 {strides = array<i32>} : memref<1x512xf32, #tpu.memory_space<vmem>>, vector<1x512xf32>,
    %59 = vector.extract_strided_slice %5 {offsets = [4, 0], sizes = [2, 512], strides = [1, 1]} : vector<6x512xf32> to vector<2x512xf32>
    %60 = tpu.iota {dimensions = array<i32: 0>} : vector<512x16xi32>
    %c0_21 = arith.constant 0 : index
    %c0_22 = arith.constant 0 : index
    %61 = vector.load %arg4[%c0_21, %c0_22] : memref<1x16xi32, #tpu.memory_space<vmem>>, vector<1x16xi32>
    %62 = vector.broadcast %61 : vector<1x16xi32> to vector<512x16xi32>
    %63 = arith.cmpi eq, %60, %62 : vector<512x16xi32>
    %64 = arith.extui %63 : vector<512x16xi1> to vector<512x16xi32>
    %65 = arith.sitofp %64 : vector<512x16xi32> to vector<512x16xf32>
    %cst_23 = arith.constant dense<0.000000e+00> : vector<2x16xf32>
    %66 = tpu.matmul %59, %65, %cst_23 {dimension_numbers = #tpu.dot_dimension_numbers<[1], [0], [0], [1], [0, 0, 1, 1], [], []>} : vector<2x512xf32>, vector<512x16xf32>, vector<2x16xf32> -> vector<2x16xf32>
    %c0_24 = arith.constant 0 : index
    %c0_25 = arith.constant 0 : index
    %67 = vector.load %arg5[%c0_24, %c0_25] : memref<1x16xf32, #tpu.memory_space<vmem>>, vector<1x16xf32>
    %68 = vector.broadcast %67 : vector<1x16xf32> to vector<2x16xf32>
    %69 = arith.mulf %66, %68 : vector<2x16xf32>
    %c0_26 = arith.constant 0 : index
    %c0_27 = arith.constant 0 : index
    %70 = vector.load %arg6[%c0_26, %c0_27] : memref<2x16xf32, #tpu.memory_space<vmem>>, vector<2x16xf32>
    %71 = vector.broadcast %67 : vector<1x16xf32> to vector<2x16xf32>
    %72 = arith.mulf %70, %71 : vector<2x16xf32>
    %73 = arith.subf %69, %72 : vector<2x16xf32>
    %74 = math.absf %73 : vector<2x16xf32>
    %75 = vector.shape_cast %74 : vector<2x16xf32> to vector<1x2x16xf32>
    %cst_28 = arith.constant dense<0.000000e+00> : vector<1xf32>
    %76 = vector.multi_reduction <add>, %75, %cst_28 [1, 2] : vector<1x2x16xf32> to vector<1xf32>
    %77 = vector.shape_cast %76 : vector<1xf32> to vector<1x1x1xf32>
    %78 = vector.extract %77[0, 0, 0] : f32 from vector<1x1x1xf32>
    %c3 = arith.constant 3 : index
    %79 = memref.load %arg8[%c3] : memref<5xf32, #tpu.memory_space<smem>>
    memref.store %78, %arg8[%c3] : memref<5xf32, #tpu.memory_space<smem>>
    %80 = vector.shape_cast %67 : vector<1x16xf32> to vector<1x1x16xf32>
    %cst_29 = arith.constant dense<0.000000e+00> : vector<1xf32>
    %81 = vector.multi_reduction <add>, %80, %cst_29 [1, 2] : vector<1x1x16xf32> to vector<1xf32>
    %82 = vector.shape_cast %81 : vector<1xf32> to vector<1x1x1xf32>
    %83 = vector.extract %82[0, 0, 0] : f32 from vector<1x1x1xf32>
    %cst_30 = arith.constant 2.000000e+00 : f32
    %84 = arith.mulf %83, %cst_30 : f32
    %c4 = arith.constant 4 : index
    %85 = memref.load %arg8[%c4] : memref<5xf32, #tpu.memory_space<smem>>
    memref.store %84, %arg8[%c4] : memref<5xf32, #tpu.memory_space<smem>>
    return
  }
}

module attributes {stable_mosaic.version = 11 : i64} {
  func.func @_resize_smoothl1_kernel(%arg0: i32, %arg1: i32, %arg2: i32, %arg3: memref<1x1x16x16xf32, #tpu.memory_space<vmem>>, %arg4: memref<128x16xf32, #tpu.memory_space<vmem>>, %arg5: memref<16x512xf32, #tpu.memory_space<vmem>>, %arg6: memref<1x1x128x512xf32, #tpu.memory_space<vmem>>, %arg7: memref<1x1x8x128xf32, #tpu.memory_space<vmem>>) attributes {dimension_semantics = [#tpu.dimension_semantics<parallel>, #tpu.dimension_semantics<parallel>, #tpu.dimension_semantics<arbitrary>], iteration_bounds = array<i64: 2, 1, 4>, scalar_prefetch = 0 : i64, scratch_operands = 0 : i64, tpu.core_type = #tpu.core_type<tc>, window_params = [{transform_indices = @transform_0, window_bounds = array<i64: 1, 1, 16, 16>}, {transform_indices = @transform_1, window_bounds = array<i64: 128, 16>}, {pipeline_mode = #tpu.pipeline_mode<synchronous>, transform_indices = @transform_2, window_bounds = array<i64: 16, 512>}, {transform_indices = @transform_3, window_bounds = array<i64: 1, 1, 128, 512>}, {transform_indices = @transform_4, window_bounds = array<i64: 1, 1, 8, 128>}]} {
    %c0_i32 = arith.constant 0 : i32
    %0 = arith.cmpi eq, %arg2, %c0_i32 : i32
    %1 = arith.extui %0 : i1 to i32
    %c0_i32_0 = arith.constant 0 : i32
    %2 = arith.cmpi ne, %1, %c0_i32_0 : i32
    scf.if %2 {
      %cst_25 = arith.constant 0.000000e+00 : f32
      %36 = vector.broadcast %cst_25 : f32 to vector<1x1x8x128xf32>
      %c0_26 = arith.constant 0 : index
      %c0_27 = arith.constant 0 : index
      %c0_28 = arith.constant 0 : index
      %c0_29 = arith.constant 0 : index
      %37 = vector.load %arg7[%c0_26, %c0_27, %c0_28, %c0_29] : memref<1x1x8x128xf32, #tpu.memory_space<vmem>>, vector<1x1x8x128xf32>
      tpu.vector_store %arg7[%c0_26, %c0_27, %c0_28, %c0_29], %36 {strides = array<i32>} : memref<1x1x8x128xf32, #tpu.memory_space<vmem>>, vector<1x1x8x128xf32>,
    } else {
    }
    %c0 = arith.constant 0 : index
    %c0_1 = arith.constant 0 : index
    %c0_2 = arith.constant 0 : index
    %c0_3 = arith.constant 0 : index
    %3 = vector.load %arg3[%c0, %c0_1, %c0_2, %c0_3] : memref<1x1x16x16xf32, #tpu.memory_space<vmem>>, vector<1x1x16x16xf32>
    %4 = vector.shape_cast %3 : vector<1x1x16x16xf32> to vector<16x16xf32>
    %c0_4 = arith.constant 0 : index
    %c0_5 = arith.constant 0 : index
    %5 = vector.load %arg5[%c0_4, %c0_5] : memref<16x512xf32, #tpu.memory_space<vmem>>, vector<16x512xf32>
    %cst = arith.constant dense<0.000000e+00> : vector<16x512xf32>
    %6 = tpu.matmul %4, %5, %cst {dimension_numbers = #tpu.dot_dimension_numbers<[1], [0], [0], [1], [0, 0, 1, 1], [], []>} : vector<16x16xf32>, vector<16x512xf32>, vector<16x512xf32> -> vector<16x512xf32>
    %c0_6 = arith.constant 0 : index
    %c0_7 = arith.constant 0 : index
    %7 = vector.load %arg4[%c0_6, %c0_7] : memref<128x16xf32, #tpu.memory_space<vmem>>, vector<128x16xf32>
    %cst_8 = arith.constant dense<0.000000e+00> : vector<128x512xf32>
    %8 = tpu.matmul %7, %6, %cst_8 {dimension_numbers = #tpu.dot_dimension_numbers<[1], [0], [0], [1], [0, 0, 1, 1], [], []>} : vector<128x16xf32>, vector<16x512xf32>, vector<128x512xf32> -> vector<128x512xf32>
    %c0_9 = arith.constant 0 : index
    %c0_10 = arith.constant 0 : index
    %c0_11 = arith.constant 0 : index
    %c0_12 = arith.constant 0 : index
    %9 = vector.load %arg6[%c0_9, %c0_10, %c0_11, %c0_12] : memref<1x1x128x512xf32, #tpu.memory_space<vmem>>, vector<1x1x128x512xf32>
    %10 = vector.shape_cast %9 : vector<1x1x128x512xf32> to vector<128x512xf32>
    %11 = arith.subf %8, %10 : vector<128x512xf32>
    %12 = math.absf %11 : vector<128x512xf32>
    %cst_13 = arith.constant 1.000000e+00 : f32
    %13 = vector.broadcast %cst_13 : f32 to vector<128x512xf32>
    %14 = arith.cmpf olt, %12, %13 : vector<128x512xf32>
    %cst_14 = arith.constant 5.000000e-01 : f32
    %15 = vector.broadcast %cst_14 : f32 to vector<128x512xf32>
    %16 = arith.mulf %15, %11 : vector<128x512xf32>
    %17 = arith.mulf %16, %11 : vector<128x512xf32>
    %cst_15 = arith.constant 5.000000e-01 : f32
    %18 = vector.broadcast %cst_15 : f32 to vector<128x512xf32>
    %19 = arith.subf %12, %18 : vector<128x512xf32>
    %20 = arith.select %14, %17, %19 : vector<128x512xi1>, vector<128x512xf32>
    %21 = vector.extract_strided_slice %20 {offsets = [0, 0], sizes = [128, 128], strides = [1, 1]} : vector<128x512xf32> to vector<128x128xf32>
    %22 = vector.extract_strided_slice %20 {offsets = [0, 128], sizes = [128, 128], strides = [1, 1]} : vector<128x512xf32> to vector<128x128xf32>
    %23 = arith.addf %21, %22 : vector<128x128xf32>
    %24 = vector.extract_strided_slice %20 {offsets = [0, 256], sizes = [128, 128], strides = [1, 1]} : vector<128x512xf32> to vector<128x128xf32>
    %25 = arith.addf %23, %24 : vector<128x128xf32>
    %26 = vector.extract_strided_slice %20 {offsets = [0, 384], sizes = [128, 128], strides = [1, 1]} : vector<128x512xf32> to vector<128x128xf32>
    %27 = arith.addf %25, %26 : vector<128x128xf32>
    %28 = vector.shape_cast %27 : vector<128x128xf32> to vector<16x8x128xf32>
    %cst_16 = arith.constant dense<0.000000e+00> : vector<8x128xf32>
    %29 = vector.multi_reduction <add>, %28, %cst_16 [0] : vector<16x8x128xf32> to vector<8x128xf32>
    %c0_17 = arith.constant 0 : index
    %c0_18 = arith.constant 0 : index
    %c0_19 = arith.constant 0 : index
    %c0_20 = arith.constant 0 : index
    %30 = vector.load %arg7[%c0_17, %c0_18, %c0_19, %c0_20] : memref<1x1x8x128xf32, #tpu.memory_space<vmem>>, vector<1x1x8x128xf32>
    %31 = vector.shape_cast %30 : vector<1x1x8x128xf32> to vector<8x128xf32>
    %32 = arith.addf %31, %29 : vector<8x128xf32>
    %c0_21 = arith.constant 0 : index
    %c0_22 = arith.constant 0 : index
    %c0_23 = arith.constant 0 : index
    %c0_24 = arith.constant 0 : index
    %33 = vector.load %arg7[%c0_21, %c0_22, %c0_23, %c0_24] : memref<1x1x8x128xf32, #tpu.memory_space<vmem>>, vector<1x1x8x128xf32>
    %34 = vector.shape_cast %33 : vector<1x1x8x128xf32> to vector<8x128xf32>
    %35 = vector.shape_cast %32 : vector<8x128xf32> to vector<1x1x8x128xf32>
    tpu.vector_store %arg7[%c0_21, %c0_22, %c0_23, %c0_24], %35 {strides = array<i32>} : memref<1x1x8x128xf32, #tpu.memory_space<vmem>>, vector<1x1x8x128xf32>,
    return
  }
  func.func @transform_0(%arg0: i32, %arg1: i32, %arg2: i32) -> (i32, i32, i32, i32) {
    %c0_i32 = arith.constant 0 : i32
    %c0_i32_0 = arith.constant 0 : i32
    %c0_i32_1 = arith.constant 0 : i32
    return %arg0, %arg1, %c0_i32, %c0_i32_0 : i32, i32, i32, i32
  }
  func.func @transform_1(%arg0: i32, %arg1: i32, %arg2: i32) -> (i32, i32) {
    %c0_i32 = arith.constant 0 : i32
    %c0_i32_0 = arith.constant 0 : i32
    return %arg2, %c0_i32 : i32, i32
  }
  func.func @transform_2(%arg0: i32, %arg1: i32, %arg2: i32) -> (i32, i32) {
    %c0_i32 = arith.constant 0 : i32
    %c0_i32_0 = arith.constant 0 : i32
    %c0_i32_1 = arith.constant 0 : i32
    return %c0_i32, %c0_i32_0 : i32, i32
  }
  func.func @transform_3(%arg0: i32, %arg1: i32, %arg2: i32) -> (i32, i32, i32, i32) {
    %c0_i32 = arith.constant 0 : i32
    %c0_i32_0 = arith.constant 0 : i32
    return %arg0, %arg1, %arg2, %c0_i32 : i32, i32, i32, i32
  }
  func.func @transform_4(%arg0: i32, %arg1: i32, %arg2: i32) -> (i32, i32, i32, i32) {
    %c0_i32 = arith.constant 0 : i32
    %c0_i32_0 = arith.constant 0 : i32
    %c0_i32_1 = arith.constant 0 : i32
    return %arg0, %arg1, %c0_i32, %c0_i32_0 : i32, i32, i32, i32
  }
}

</mosaic_0001>

<bundles_post_ra>
// kernel: ctdet_loss.2
= control target key start
LH: loop header
LB: loop body
LE: loop exit
PB: predicated region body
PF: predicated region fallthrough
CT: control target
= control target key end

     0   :  { %vm46_vm0 = vcmask 1043456   ;;  %v379_v2 = vlaneseq  ;;  %v1214_v5 = vmov 0.0   ;;  %vm42_vm1 = vcmask 31744   ;;  %s1542_s0 = inlined_call_operand.vmem [shape: f32[4,512], index: 0, kind: input, shape index: {}]   ;;  %s1543_s1 = inlined_call_operand.vmem [shape: f32[6,4], index: 1, kind: input, shape index: {}]   ;;  %s1544_s2 = inlined_call_operand.vmem [shape: f32[6,1], index: 2, kind: input, shape index: {}]   ;;  %s1545_s3 = inlined_call_operand.vmem [shape: f32[3,512], index: 3, kind: input, shape index: {}]   ;;  %s1546_s4 = inlined_call_operand.vmem [shape: s32[1,16], index: 4, kind: input, shape index: {}]   ;;  %s1547_s5 = inlined_call_operand.vmem [shape: f32[1,16], index: 5, kind: input, shape index: {}]   ;;  %s1548_s6 = inlined_call_operand.vmem [shape: f32[2,16], index: 6, kind: input, shape index: {}]   ;;  %s1549_s7 = inlined_call_operand.vmem [shape: f32[1,512], index: 7, kind: output, shape index: {0}]   ;;  %s1550_s8 = inlined_call_operand.vmem [shape: f32[5], index: 8, kind: output, shape index: {1}]  }
   0x1   :  { %v30_v0 = vld [vmem:[%s1542_s0] sm:$0xff]  ;;  %v31_v1 = vld [vmem:[%s1542_s0 + $0x8] sm:$0xff]  ;;  %119 = vmatprep.mubr.f32.mxu0 %v1214_v5  ;;  %190 = vmatprep.mubr.f32.mxu1 %v1214_v5  ;;  %v1215_v7 = vmov 0  }
   0x2   :  { %v40_v3 = vcombine.high %v30_v0, %v30_v0  ;;  %v41_v4 = vcombine.high %v31_v1, %v31_v1  ;;  %v29_v6 = vld [vmem:[%s1543_s1] sm:$0x3f]  ;;  %1165 = vset.pattern.permute.xlu0 %v1215_v7  ;;  %v1276_v8 = vshrl.u32 %v379_v2, 7 }
   0x3   :  { %v1281_v9 = vld [vmem:[%s1546_s4] ss:$0 sm:$0xff] }
   0x4   :  { %14 = vsyncpa [#allocation3], 0  ;;  %873 = vmatprep.subr.msk.mxu0 %vm46_vm0, %v40_v3  ;;  %876 = vmatprep.subr.msk.mxu1 %vm46_vm0, %v41_v4  ;;  %v32_v10 = vld [vmem:[%s1544_s2] sm:$0x3f]  ;;  %v422_v11 = vadd.s32 128, %v1276_v8  ;;  %v423_v12 = vadd.s32 136, %v1276_v8  ;;  %vm475_vm2 = vcmp.eq.s32.totalorder %v1276_v8, %v1281_v9 }
   0x5   :  { %874 = vmatpush1.msk.msra.mxu0 %vm46_vm0, %v30_v0  ;;  %877 = vmatpush1.msk.msra.mxu1 %vm46_vm0, %v31_v1  ;;  %v454_v13 = vadd.s32 384, %v1276_v8  ;;  %v455_v14 = vadd.s32 392, %v1276_v8  ;;  %v407_v15 = vadd.s32 8, %v1276_v8  ;;  %v438_v16 = vadd.s32 256, %v1276_v8  ;;  %s862_s23 = sshll.u32 %s1550_s8, 4  ;;  %s863_s23 = int_to_ptr.vmem [resolvable:$true] %s862_s23 }
   0x6   :  { %875 = vmatmul.mubr.msk.f32.vlgmr.msra.gmra.mrb[0].mxu0 %vm42_vm1, %v29_v6  ;;  %878 = vmatmul.mubr.msk.f32.vlgmr.msra.gmra.mrb[0].mxu1 %vm42_vm1, %v29_v6  ;;  %v439_v17 = vadd.s32 264, %v1276_v8  ;;  %vm491_vm3 = vcmp.eq.s32.totalorder %v422_v11, %v1281_v9  ;;  %vm492_vm4 = vcmp.eq.s32.totalorder %v423_v12, %v1281_v9  ;;  %v424_v18 = vadd.s32 144, %v1276_v8  ;;  %s1200_s26 = scalar_lea.vmem %s863_s23, 16  ;;  %p1205_p1 = scmp.lt.s32.totalorder %s863_s23, %s863_s23 }
   0x7   :  { %35 = vperm.xlu0 %1165, %v32_v10   ;;  %vm523_vm5 = vcmp.eq.s32.totalorder %v454_v13, %v1281_v9  ;;  %vm524_vm6 = vcmp.eq.s32.totalorder %v455_v14, %v1281_v9  ;;  %vm1086_vm7 = vmpackc.low %vm492_vm4, %vm491_vm3  ;;  %vm476_vm8 = vcmp.eq.s32.totalorder %v407_v15, %v1281_v9  ;;  %vm507_vm9 = vcmp.eq.s32.totalorder %v438_v16, %v1281_v9  ;;  %v1478_v15 = vld [vmem:[%s1545_s3] sm:$0x77]  ;;  %v1483_v16 = vld [vmem:[%s1545_s3 + $0x8] sm:$0x77]  ;;  %p1201_p0 = scmp.ne.s32.totalorder %s863_s23, %s1200_s26  ;;  %p1206_p2 = scmp.lt.s32.totalorder %s1200_s26, %s1200_s26 }
   0x8   :  { %vm508_vm10 = vcmp.eq.s32.totalorder %v439_v17, %v1281_v9  ;;  %v1216_v19 = vmov 1.0|1.0   ;;  %vm1118_vm11 = vmpackc.low %vm524_vm6, %vm523_vm5  ;;  %v425_v20 = vadd.s32 152, %v1276_v8  ;;  %v456_v21 = vadd.s32 400, %v1276_v8 }
   0x9   :  { %1087 = vmatprep.subr.msk.bf16.mxu0 %vm1086_vm7, %v1216_v19  ;;  %v457_v22 = vadd.s32 408, %v1276_v8  ;;  %v408_v23 = vadd.s32 16, %v1276_v8  ;;  %1119 = vmatprep.subr.msk.bf16.mxu1 %vm1118_vm11, %v1216_v19  ;;  %vm1088_vm12 = vmpackc.low %vm476_vm8, %vm475_vm2  ;;  %vm493_vm13 = vcmp.eq.s32.totalorder %v424_v18, %v1281_v9  ;;  %v409_v24 = vadd.s32 24, %v1276_v8  ;;  %p1207_p3 = por %p1206_p2, %p1205_p1 }
   0xa   :  { %v440_v25 = vadd.s32 272, %v1276_v8  ;;  %v441_v26 = vadd.s32 280, %v1276_v8  ;;  %1089 = vmatpush3.bf16.msk.msra.mxu0 %vm1088_vm12, %v1216_v19  ;;  %vm1120_vm14 = vmpackc.low %vm508_vm10, %vm507_vm9  ;;  %vm494_vm15 = vcmp.eq.s32.totalorder %v425_v20, %v1281_v9  ;;  %vm525_vm0 = vcmp.eq.s32.totalorder %v456_v21, %v1281_v9 }
   0xb   :  { %vm526_vm1 = vcmp.eq.s32.totalorder %v457_v22, %v1281_v9  ;;  %vm477_vm2 = vcmp.eq.s32.totalorder %v408_v23, %v1281_v9  ;;  %1121 = vmatpush3.bf16.msk.msra.mxu1 %vm1120_vm14, %v1216_v19  ;;  %vm1090_vm3 = vmpackc.low %vm494_vm15, %vm493_vm13  ;;  %vm478_vm4 = vcmp.eq.s32.totalorder %v409_v24, %v1281_v9  ;;  %v426_v27 = vadd.s32 160, %v1276_v8  ;;  %p1208_p4 = pnand %p1207_p3, %p1201_p0 }
   0xc   :  { %vm509_vm5 = vcmp.eq.s32.totalorder %v440_v25, %v1281_v9  ;;  %vm510_vm6 = vcmp.eq.s32.totalorder %v441_v26, %v1281_v9  ;;  %1091 = vmatprep.subr.msk.bf16.mxu0 %vm1090_vm3, %v1216_v19  ;;  %vm1122_vm7 = vmpackc.low %vm526_vm1, %vm525_vm0  ;;  %v427_v28 = vadd.s32 168, %v1276_v8  ;;  %v458_v29 = vadd.s32 416, %v1276_v8 }
   0xd   :  { %v459_v30 = vadd.s32 424, %v1276_v8  ;;  %v410_v31 = vadd.s32 32, %v1276_v8  ;;  %1123 = vmatprep.subr.msk.bf16.mxu1 %vm1122_vm7, %v1216_v19  ;;  %vm1092_vm8 = vmpackc.low %vm478_vm4, %vm477_vm2  ;;  %vm495_vm9 = vcmp.eq.s32.totalorder %v426_v27, %v1281_v9  ;;  %v411_v32 = vadd.s32 40, %v1276_v8 }
   0xe   :  { %v442_v33 = vadd.s32 288, %v1276_v8  ;;  %v443_v34 = vadd.s32 296, %v1276_v8  ;;  %1093 = vmatpush3.bf16.msk.msra.mxu0 %vm1092_vm8, %v1216_v19  ;;  %vm1124_vm10 = vmpackc.low %vm510_vm6, %vm509_vm5  ;;  %vm496_vm11 = vcmp.eq.s32.totalorder %v427_v28, %v1281_v9  ;;  %vm527_vm12 = vcmp.eq.s32.totalorder %v458_v29, %v1281_v9 }
   0xf   :  { %vm528_vm13 = vcmp.eq.s32.totalorder %v459_v30, %v1281_v9  ;;  %vm479_vm14 = vcmp.eq.s32.totalorder %v410_v31, %v1281_v9  ;;  %1125 = vmatpush3.bf16.msk.msra.mxu1 %vm1124_vm10, %v1216_v19  ;;  %vm1094_vm15 = vmpackc.low %vm496_vm11, %vm495_vm9  ;;  %vm480_vm0 = vcmp.eq.s32.totalorder %v411_v32, %v1281_v9  ;;  %v428_v35 = vadd.s32 176, %v1276_v8 }
  0x10   :  { %vm511_vm1 = vcmp.eq.s32.totalorder %v442_v33, %v1281_v9  ;;  %vm512_vm2 = vcmp.eq.s32.totalorder %v443_v34, %v1281_v9  ;;  %1095 = vmatprep.subr.msk.bf16.mxu0 %vm1094_vm15, %v1216_v19  ;;  %vm1126_vm3 = vmpackc.low %vm528_vm13, %vm527_vm12  ;;  %v429_v36 = vadd.s32 184, %v1276_v8  ;;  %v460_v37 = vadd.s32 432, %v1276_v8 }
  0x11   :  { %v461_v38 = vadd.s32 440, %v1276_v8  ;;  %v412_v39 = vadd.s32 48, %v1276_v8  ;;  %1127 = vmatprep.subr.msk.bf16.mxu1 %vm1126_vm3, %v1216_v19  ;;  %vm1096_vm4 = vmpackc.low %vm480_vm0, %vm479_vm14  ;;  %vm497_vm5 = vcmp.eq.s32.totalorder %v428_v35, %v1281_v9  ;;  %v413_v40 = vadd.s32 56, %v1276_v8 }
  0x12   :  { %v444_v41 = vadd.s32 304, %v1276_v8  ;;  %v445_v42 = vadd.s32 312, %v1276_v8  ;;  %1097 = vmatpush3.bf16.msk.msra.mxu0 %vm1096_vm4, %v1216_v19  ;;  %vm1128_vm6 = vmpackc.low %vm512_vm2, %vm511_vm1  ;;  %vm498_vm7 = vcmp.eq.s32.totalorder %v429_v36, %v1281_v9  ;;  %vm529_vm8 = vcmp.eq.s32.totalorder %v460_v37, %v1281_v9 }
  0x13   :  { %vm530_vm9 = vcmp.eq.s32.totalorder %v461_v38, %v1281_v9  ;;  %vm481_vm10 = vcmp.eq.s32.totalorder %v412_v39, %v1281_v9  ;;  %1129 = vmatpush3.bf16.msk.msra.mxu1 %vm1128_vm6, %v1216_v19  ;;  %vm1098_vm11 = vmpackc.low %vm498_vm7, %vm497_vm5  ;;  %vm482_vm12 = vcmp.eq.s32.totalorder %v413_v40, %v1281_v9  ;;  %v430_v43 = vadd.s32 192, %v1276_v8 }
  0x14   :  { %vm513_vm13 = vcmp.eq.s32.totalorder %v444_v41, %v1281_v9  ;;  %vm514_vm14 = vcmp.eq.s32.totalorder %v445_v42, %v1281_v9  ;;  %1099 = vmatprep.subr.msk.bf16.mxu0 %vm1098_vm11, %v1216_v19  ;;  %vm1130_vm15 = vmpackc.low %vm530_vm9, %vm529_vm8  ;;  %v431_v44 = vadd.s32 200, %v1276_v8  ;;  %v462_v45 = vadd.s32 448, %v1276_v8 }
  0x15   :  { %v463_v46 = vadd.s32 456, %v1276_v8  ;;  %v414_v47 = vadd.s32 64, %v1276_v8  ;;  %1131 = vmatprep.subr.msk.bf16.mxu1 %vm1130_vm15, %v1216_v19  ;;  %vm1100_vm0 = vmpackc.low %vm482_vm12, %vm481_vm10  ;;  %vm499_vm1 = vcmp.eq.s32.totalorder %v430_v43, %v1281_v9  ;;  %v415_v48 = vadd.s32 72, %v1276_v8 }
  0x16   :  { %v446_v49 = vadd.s32 320, %v1276_v8  ;;  %v447_v50 = vadd.s32 328, %v1276_v8  ;;  %1101 = vmatpush3.bf16.msk.msra.mxu0 %vm1100_vm0, %v1216_v19  ;;  %vm1132_vm2 = vmpackc.low %vm514_vm14, %vm513_vm13  ;;  %vm500_vm3 = vcmp.eq.s32.totalorder %v431_v44, %v1281_v9  ;;  %vm531_vm4 = vcmp.eq.s32.totalorder %v462_v45, %v1281_v9 }
  0x17   :  { %vm532_vm5 = vcmp.eq.s32.totalorder %v463_v46, %v1281_v9  ;;  %vm483_vm6 = vcmp.eq.s32.totalorder %v414_v47, %v1281_v9  ;;  %1133 = vmatpush3.bf16.msk.msra.mxu1 %vm1132_vm2, %v1216_v19  ;;  %vm1102_vm7 = vmpackc.low %vm500_vm3, %vm499_vm1  ;;  %vm484_vm8 = vcmp.eq.s32.totalorder %v415_v48, %v1281_v9  ;;  %v432_v51 = vadd.s32 208, %v1276_v8 }
  0x18   :  { %vm515_vm9 = vcmp.eq.s32.totalorder %v446_v49, %v1281_v9  ;;  %vm516_vm10 = vcmp.eq.s32.totalorder %v447_v50, %v1281_v9  ;;  %1103 = vmatprep.subr.msk.bf16.mxu0 %vm1102_vm7, %v1216_v19  ;;  %vm1134_vm11 = vmpackc.low %vm532_vm5, %vm531_vm4  ;;  %v433_v52 = vadd.s32 216, %v1276_v8  ;;  %v464_v53 = vadd.s32 464, %v1276_v8 }
  0x19   :  { %v465_v54 = vadd.s32 472, %v1276_v8  ;;  %v416_v55 = vadd.s32 80, %v1276_v8  ;;  %1135 = vmatprep.subr.msk.bf16.mxu1 %vm1134_vm11, %v1216_v19  ;;  %vm1104_vm12 = vmpackc.low %vm484_vm8, %vm483_vm6  ;;  %vm501_vm13 = vcmp.eq.s32.totalorder %v432_v51, %v1281_v9  ;;  %v417_v56 = vadd.s32 88, %v1276_v8 }
  0x1a   :  { %v448_v57 = vadd.s32 336, %v1276_v8  ;;  %v449_v58 = vadd.s32 344, %v1276_v8  ;;  %1105 = vmatpush3.bf16.msk.msra.mxu0 %vm1104_vm12, %v1216_v19  ;;  %vm1136_vm14 = vmpackc.low %vm516_vm10, %vm515_vm9  ;;  %vm502_vm15 = vcmp.eq.s32.totalorder %v433_v52, %v1281_v9  ;;  %vm533_vm0 = vcmp.eq.s32.totalorder %v464_v53, %v1281_v9 }
  0x1b   :  { %vm534_vm1 = vcmp.eq.s32.totalorder %v465_v54, %v1281_v9  ;;  %vm485_vm2 = vcmp.eq.s32.totalorder %v416_v55, %v1281_v9  ;;  %1137 = vmatpush3.bf16.msk.msra.mxu1 %vm1136_vm14, %v1216_v19  ;;  %vm1106_vm3 = vmpackc.low %vm502_vm15, %vm501_vm13  ;;  %vm486_vm4 = vcmp.eq.s32.totalorder %v417_v56, %v1281_v9  ;;  %v434_v59 = vadd.s32 224, %v1276_v8 }
  0x1c   :  { %vm517_vm5 = vcmp.eq.s32.totalorder %v448_v57, %v1281_v9  ;;  %vm518_vm6 = vcmp.eq.s32.totalorder %v449_v58, %v1281_v9  ;;  %1107 = vmatprep.subr.msk.bf16.mxu0 %vm1106_vm3, %v1216_v19  ;;  %vm1138_vm7 = vmpackc.low %vm534_vm1, %vm533_vm0  ;;  %v435_v60 = vadd.s32 232, %v1276_v8  ;;  %v466_v61 = vadd.s32 480, %v1276_v8 }
  0x1d   :  { %v467_v62 = vadd.s32 488, %v1276_v8  ;;  %1139 = vmatprep.subr.msk.bf16.mxu1 %vm1138_vm7, %v1216_v19  ;;  %vm1108_vm8 = vmpackc.low %vm486_vm4, %vm485_vm2  ;;  %vm503_vm9 = vcmp.eq.s32.totalorder %v434_v59, %v1281_v9  ;;  %v418_v63 = vadd.s32 96, %v1276_v8  ;;  %v419_v0 = vadd.s32 104, %v1276_v8 }
  0x1e   :  { %1109 = vmatpush3.bf16.msk.msra.mxu0 %vm1108_vm8, %v1216_v19  ;;  %vm1140_vm10 = vmpackc.low %vm518_vm6, %vm517_vm5  ;;  %vm504_vm11 = vcmp.eq.s32.totalorder %v435_v60, %v1281_v9  ;;  %vm535_vm12 = vcmp.eq.s32.totalorder %v466_v61, %v1281_v9  ;;  %v450_v1 = vadd.s32 352, %v1276_v8  ;;  %v451_v3 = vadd.s32 360, %v1276_v8 }
  0x1f   :  { %vm536_vm13 = vcmp.eq.s32.totalorder %v467_v62, %v1281_v9  ;;  %1141 = vmatpush3.bf16.msk.msra.mxu1 %vm1140_vm10, %v1216_v19  ;;  %vm1110_vm14 = vmpackc.low %vm504_vm11, %vm503_vm9  ;;  %vm487_vm0 = vcmp.eq.s32.totalorder %v418_v63, %v1281_v9  ;;  %vm488_vm1 = vcmp.eq.s32.totalorder %v419_v0, %v1281_v9  ;;  %v436_v4 = vadd.s32 240, %v1276_v8 }
  0x20   :  { %1111 = vmatprep.subr.msk.bf16.mxu0 %vm1110_vm14, %v1216_v19  ;;  %vm1142_vm15 = vmpackc.low %vm536_vm13, %vm535_vm12  ;;  %vm519_vm2 = vcmp.eq.s32.totalorder %v450_v1, %v1281_v9  ;;  %vm520_vm3 = vcmp.eq.s32.totalorder %v451_v3, %v1281_v9  ;;  %v437_v6 = vadd.s32 248, %v1276_v8  ;;  %v468_v7 = vadd.s32 496, %v1276_v8 }
  0x21   :  { %1143 = vmatprep.subr.msk.bf16.mxu1 %vm1142_vm15, %v1216_v19  ;;  %vm1112_vm4 = vmpackc.low %vm488_vm1, %vm487_vm0  ;;  %v469_v10 = vadd.s32 504, %v1276_v8  ;;  %v420_v11 = vadd.s32 112, %v1276_v8  ;;  %v421_v12 = vadd.s32 120, %v1276_v8  ;;  %v452_v13 = vadd.s32 368, %v1276_v8 }
  0x22   :  { %1113 = vmatpush3.bf16.msk.msra.mxu0 %vm1112_vm4, %v1216_v19  ;;  %vm1144_vm5 = vmpackc.low %vm520_vm3, %vm519_vm2  ;;  %vm505_vm6 = vcmp.eq.s32.totalorder %v436_v4, %v1281_v9  ;;  %vm506_vm7 = vcmp.eq.s32.totalorder %v437_v6, %v1281_v9  ;;  %vm537_vm8 = vcmp.eq.s32.totalorder %v468_v7, %v1281_v9  ;;  %v453_v14 = vadd.s32 376, %v1276_v8 }
  0x23   :  { %1145 = vmatpush3.bf16.msk.msra.mxu1 %vm1144_vm5, %v1216_v19  ;;  %vm1114_vm9 = vmpackc.low %vm506_vm7, %vm505_vm6  ;;  %vm538_vm10 = vcmp.eq.s32.totalorder %v469_v10, %v1281_v9  ;;  %vm489_vm11 = vcmp.eq.s32.totalorder %v420_v11, %v1281_v9  ;;  %vm490_vm12 = vcmp.eq.s32.totalorder %v421_v12, %v1281_v9  ;;  %vm521_vm14 = vcmp.eq.s32.totalorder %v452_v13, %v1281_v9 }
  0x24   :  { %1115 = vmatprep.subr.msk.bf16.mxu0 %vm1114_vm9, %v1216_v19  ;;  %vm1146_vm13 = vmpackc.low %vm538_vm10, %vm537_vm8  ;;  %vm522_vm0 = vcmp.eq.s32.totalorder %v453_v14, %v1281_v9  ;;  %vm315_vm2 = vcmask 1042432   ;;  %vm231_vm3 = vcmp.eq.f32.partialorder %v1478_v15, 1.0  ;;  %vm232_vm4 = vcmp.eq.f32.partialorder %v1483_v16, 1.0 }
  0x25   :  { %1147 = vmatprep.subr.msk.bf16.mxu1 %vm1146_vm13, %v1216_v19  ;;  %vm1116_vm15 = vmpackc.low %vm490_vm12, %vm489_vm11  ;;  %v1488_v9 = vsel %vm231_vm3, 1.0, %v1214_v5  ;;  %v1491_v17 = vsel %vm232_vm4, 1.0, %v1214_v5  ;;  %v1217_v27 = vmov 1966171168   ;;  %vm402_vm5 = vcmp.lt.s32.totalorder %v379_v2, 512 }
  0x26   :  { %1117 = vmatpush3.bf16.msk.msra.mxu0 %vm1116_vm15, %v1216_v19  ;;  %vm1148_vm1 = vmpackc.low %vm522_vm0, %vm521_vm14  ;;  %v1495_v18 = vcombine.high %v1488_v9, %v1488_v9  ;;  %v1501_v20 = vcombine.high %v1491_v17, %v1491_v17  ;;  %v355_v22 = vsel %vm315_vm2, %v1491_v17, 0.0  ;;  %v377_v28 = vunpack.c.l.s4 %v1217_v27 }
  0x27   :  { %1149 = vmatpush3.bf16.msk.msra.mxu1 %vm1148_vm1, %v1216_v19  ;;  %v352_v19 = vsel %vm315_vm2, %v1488_v9, 0.0  ;;  %v243_v12 = vsub.f32 1.0, %v1478_v15  ;;  %v244_v14 = vsub.f32 1.0, %v1483_v16  ;;  %vm237_vm6 = vcmp.lt.f32.partialorder %v1478_v15, 1.0 }
  0x28   :  { %v353_v21 = vsel %vm315_vm2, %v1495_v18, 0.0  ;;  %v357_v24 = vsel %vm315_vm2, %v1501_v20, 0.0  ;;  %v378_v30 = vunpack.c.0.s8 %v377_v28  ;;  %vm238_vm7 = vcmp.lt.f32.partialorder %v1483_v16, 1.0 }
  0x29   :  { %v354_v23 = vadd.f32 %v353_v21, %v352_v19  ;;  %vm827_vm8 = vcmask 123904   ;;  %vm840_vm9 = vcmask 122880  }
  0x2a   :  { %v381_v38 = vsub.s32 %v378_v30, %v1276_v8 }
  0x2b   :  { %v356_v25 = vadd.f32 %v355_v22, %v354_v23 }
  0x2d   :  { %v358_v26 = vadd.f32 %v357_v24, %v356_v25  ;;  %v245_v25 = vmul.f32 %v243_v12, %v243_v12 }
  0x2f   :  { %359 = vadd.xlane.f32.xlu1 %v358_v26  ;;  %v246_v26 = vmul.f32 %v244_v14, %v244_v14  ;;  %v247_v27 = vmul.f32 %v245_v25, %v245_v25 }
  0x31   :  { %v248_v28 = vmul.f32 %v246_v26, %v246_v26 }
  0x86   :  { %v36_v29 = vpop.permute.xlu0 %35 }
  0xd9   :  { %v121_v31 = vpop.f32.mrb[0].mxu0  ;;  %v192_v32 = vpop.f32.mrb[0].mxu1 }
  0xda   :  { %v122_v33 = vadd.f32 %v121_v31, %v36_v29  ;;  %v193_v34 = vadd.f32 %v192_v32, %v36_v29  ;;  %v123_v35 = vpop.f32.mrb[1].mxu0  ;;  %v194_v36 = vpop.f32.mrb[1].mxu1 }
  0xdb   :  { %v124_v37 = vadd.f32 %v123_v35, %v36_v29  ;;  %v195_v39 = vadd.f32 %v194_v36, %v36_v29 }
  0xdc   :  { %v879_v40 = vmul.f32 -1.442695, %v122_v33  ;;  %v881_v41 = vmul.f32 -1.442695, %v193_v34  ;;  %v667_v46 = vrot.slane %v122_v33, 4  ;;  %v669_v49 = vrot.slane %v193_v34, 4 }
  0xdd   :  { %v880_v42 = vmul.f32 -1.442695, %v124_v37  ;;  %v374_v43 = vcombine.low %v122_v33, %v124_v37  ;;  %v882_v44 = vmul.f32 -1.442695, %v195_v39  ;;  %v375_v45 = vcombine.low %v193_v34, %v195_v39 }
  0xde   :  { %1168 = vpow2.f32 %v879_v40  ;;  %v668_v47 = vrot.slane %v124_v37, 4  ;;  %v670_v48 = vrot.slane %v195_v39, 4  ;;  %v297_v33 = vcombine.high %v247_v27, %v247_v27 }
  0xdf   :  { %1170 = vpow2.f32 %v881_v41  ;;  %v382_v50 = vrot.slane %v374_v43, %v381_v38  ;;  %v389_v51 = vrot.slane %v375_v45, %v381_v38  ;;  %v885_v37 = vsel %vm237_vm6, 1.0, %v1214_v5 }
  0xe0   :  { %1172 = vpow2.f32 %v880_v42  ;;  %739 = vmatprep.mubr.f32.mxu0 %v668_v47  ;;  %809 = vmatprep.mubr.f32.mxu1 %v670_v48  ;;  %v886_v43 = vsel %vm238_vm7, 1.0, %v1214_v5 }
  0xe1   :  { %1174 = vpow2.f32 %v882_v44  ;;  %v390_v52 = vcombine.high %v382_v50, %v389_v51  ;;  %740 = vmatmul.mubr.f32.vlgmr.msra.gmra.mrb[2].mxu0 %v667_v46  ;;  %810 = vmatmul.mubr.f32.vlgmr.msra.gmra.mrb[2].mxu1 %v669_v49 }
  0xe3   :  { %v397_v53 = vrot.slane %v390_v52, %v381_v38  ;;  %v298_v38 = vcombine.high %v248_v28, %v248_v28 }
  0xe5   :  { %v398_v54 = vcombine.high %v397_v53, %v397_v53 }
  0xe7   :  { %404 = vst.msk [vmem:[%s1549_s7] sm:$0xf] %vm402_vm5, %v398_v54 }
  0xe8   :  { %v1169_v55 = vpop.eup %1168 }
  0xe9   :  { %v1171_v56 = vpop.eup %1170  ;;  %v209_v57 = vadd.f32 1.0, %v1169_v55 }
  0xea   :  { %v1173_v58 = vpop.eup %1172  ;;  %v211_v59 = vadd.f32 1.0, %v1171_v56 }
  0xeb   :  { %v1175_v60 = vpop.eup %1174  ;;  %1176 = vrcp.f32 %v209_v57  ;;  %v210_v61 = vadd.f32 1.0, %v1173_v58 }
  0xec   :  { %1178 = vrcp.f32 %v211_v59  ;;  %v212_v62 = vadd.f32 1.0, %v1175_v60 }
  0xed   :  { %1180 = vrcp.f32 %v210_v61 }
  0xee   :  { %1182 = vrcp.f32 %v212_v62 }
  0xf5   :  { %v1177_v63 = vpop.eup %1176 }
  0xf6   :  { %v1179_v0 = vpop.eup %1178  ;;  %v221_v2 = vmax.f32 %v1177_v63, 0.0001 }
  0xf7   :  { %v1181_v1 = vpop.eup %1180  ;;  %v223_v3 = vmax.f32 %v1179_v0, 0.0001  ;;  %v307_v0 = vcombine.high %v885_v37, %v885_v37 }
  0xf8   :  { %v1183_v4 = vpop.eup %1182  ;;  %v225_v6 = vmin.f32 %v221_v2, 0.9999  ;;  %v222_v7 = vmax.f32 %v1181_v1, 0.0001 }
  0xf9   :  { %v227_v10 = vmin.f32 %v223_v3, 0.9999  ;;  %v224_v11 = vmax.f32 %v1183_v4, 0.0001 }
  0xfa   :  { %v226_v13 = vmin.f32 %v222_v7, 0.9999  ;;  %1184 = vlog2.f32 %v225_v6  ;;  %v257_v19 = vsub.f32 1.0, %v225_v6  ;;  %v287_v46 = vmul.f32 %v225_v6, %v225_v6 }
  0xfb   :  { %v228_v21 = vmin.f32 %v224_v11, 0.9999  ;;  %1186 = vlog2.f32 %v227_v10  ;;  %v259_v23 = vsub.f32 1.0, %v227_v10  ;;  %v289_v51 = vmul.f32 %v227_v10, %v227_v10 }
  0xfc   :  { %1188 = vlog2.f32 %v226_v13  ;;  %v258_v22 = vsub.f32 1.0, %v226_v13  ;;  %v261_v32 = vmul.f32 %v257_v19, %v257_v19  ;;  %v288_v56 = vmul.f32 %v226_v13, %v226_v13 }
  0xfd   :  { %1190 = vlog2.f32 %v228_v21  ;;  %v260_v24 = vsub.f32 1.0, %v228_v21  ;;  %v263_v36 = vmul.f32 %v259_v23, %v259_v23  ;;  %v290_v62 = vmul.f32 %v228_v21, %v228_v21 }
  0xfe   :  { %1192 = vlog2.f32 %v257_v19  ;;  %v262_v41 = vmul.f32 %v258_v22, %v258_v22  ;;  %v308_v7 = vcombine.high %v886_v43, %v886_v43 }
  0xff   :  { %1194 = vlog2.f32 %v258_v22  ;;  %v264_v45 = vmul.f32 %v260_v24, %v260_v24 }
 0x100   :  { %1196 = vlog2.f32 %v259_v23 }
 0x101   :  { %1198 = vlog2.f32 %v260_v24 }
 0x104   :  { %v1185_v29 = vpop.eup %1184 }
 0x105   :  { %v1187_v30 = vpop.eup %1186  ;;  %v250_v31 = vmul.f32 0.6931472, %v1185_v29 }
 0x106   :  { %v1189_v34 = vpop.eup %1188  ;;  %v254_v35 = vmul.f32 0.6931472, %v1187_v30  ;;  %v360_v30 = vpop.xlane.xlu1 %359 }
 0x107   :  { %v1191_v39 = vpop.eup %1190  ;;  %v252_v40 = vmul.f32 0.6931472, %v1189_v34  ;;  %v265_v42 = vmul.f32 %v261_v32, %v250_v31  ;;  %v361_v31 = vrot.slane %v360_v30, 4 }
 0x108   :  { %v1193_v15 = vpop.eup %1192  ;;  %v256_v44 = vmul.f32 0.6931472, %v1191_v39  ;;  %v267_v16 = vmul.f32 %v263_v36, %v254_v35 }
 0x109   :  { %v1195_v47 = vpop.eup %1194  ;;  %v266_v48 = vmul.f32 %v262_v41, %v252_v40  ;;  %v275_v49 = vmul.f32 %v1488_v9, %v265_v42  ;;  %v280_v50 = vmul.f32 0.6931472, %v1193_v15  ;;  %v362_v32 = vadd.f32 %v361_v31, %v360_v30 }
 0x10a   :  { %v1197_v52 = vpop.eup %1196  ;;  %v268_v53 = vmul.f32 %v264_v45, %v256_v44  ;;  %v277_v54 = vmul.f32 %v1491_v17, %v267_v16  ;;  %v282_v55 = vmul.f32 0.6931472, %v1195_v47  ;;  %v819_v47 = vsub.s32 0, %v1276_v8 }
 0x10b   :  { %v1199_v57 = vpop.eup %1198  ;;  %v276_v5 = vmul.f32 %v1495_v18, %v266_v48  ;;  %v316_v58 = vsel %vm315_vm2, %v275_v49, 0.0  ;;  %v284_v59 = vmul.f32 0.6931472, %v1197_v52  ;;  %v291_v60 = vmul.f32 %v287_v46, %v280_v50  ;;  %v815_v50 = vld [vmem:[%s1547_s5] sm:$0x1] }
 0x10c   :  { %v286_v61 = vmul.f32 0.6931472, %v1199_v57  ;;  %v292_v63 = vmul.f32 %v288_v56, %v282_v55  ;;  %v278_v9 = vmul.f32 %v1501_v20, %v268_v53  ;;  %v319_v18 = vsel %vm315_vm2, %v277_v54, 0.0  ;;  %v823_v56 = vld [vmem:[%s1548_s6] sm:$0x3] }
 0x10d   :  { %v317_v2 = vsel %vm315_vm2, %v276_v5, 0.0  ;;  %v293_v1 = vmul.f32 %v289_v51, %v284_v59  ;;  %v301_v3 = vmul.f32 %v291_v60, %v247_v27  ;;  %v363_v35 = vrot.slane %v362_v32, 2 }
 0x10e   :  { %v318_v17 = vadd.f32 %v317_v2, %v316_v58  ;;  %v294_v4 = vmul.f32 %v290_v62, %v286_v61  ;;  %v302_v6 = vmul.f32 %v297_v33, %v292_v63  ;;  %v321_v19 = vsel %vm315_vm2, %v278_v9, 0.0 }
 0x10f   :  { %v303_v10 = vmul.f32 %v293_v1, %v248_v28  ;;  %v311_v11 = vmul.f32 %v885_v37, %v301_v3  ;;  %v364_v41 = vadd.f32 %v363_v35, %v362_v32  ;;  %v820_v53 = vrot.slane %v815_v50, %v819_v47 }
 0x110   :  { %v320_v12 = vadd.f32 %v319_v18, %v318_v17  ;;  %v304_v13 = vmul.f32 %v298_v38, %v294_v4  ;;  %v312_v14 = vmul.f32 %v307_v0, %v302_v6  ;;  %v841_v63 = vsel %vm840_vm9, %v815_v50, 0.0 }
 0x111   :  { %v313_v21 = vmul.f32 %v886_v43, %v303_v10  ;;  %v334_v20 = vsel %vm315_vm2, %v311_v11, 0.0  ;;  %v365_v45 = vrot.slane %v364_v41, 1  ;;  %v824_v58 = vmul.f32 %v823_v56, %v820_v53 }
 0x112   :  { %v322_v22 = vadd.f32 %v321_v19, %v320_v12  ;;  %v314_v23 = vmul.f32 %v308_v7, %v304_v13  ;;  %v335_v24 = vsel %vm315_vm2, %v312_v14, 0.0 }
 0x113   :  { %v336_v25 = vadd.f32 %v335_v24, %v334_v20  ;;  %v337_v26 = vsel %vm315_vm2, %v313_v21, 0.0  ;;  %v366_v48 = vadd.f32 %v365_v45, %v364_v41 }
 0x114   :  { %323 = vadd.xlane.f32.xlu0 %v322_v22  ;;  %v339_v28 = vsel %vm315_vm2, %v314_v23, 0.0 }
 0x115   :  { %v338_v27 = vadd.f32 %v337_v26, %v336_v25 }
 0x117   :  { %v340_v29 = vadd.f32 %v339_v28, %v338_v27 }
 0x119   :  { %341 = vadd.xlane.f32.xlu1 %v340_v29 }
 0x1a1   :  { %v324_v33 = vpop.xlane.xlu0 %323 }
 0x1a2   :  { %v325_v34 = vrot.slane %v324_v33, 4 }
 0x1a4   :  { %v326_v36 = vadd.f32 %v325_v34, %v324_v33 }
 0x1a6   :  { %v327_v37 = vrot.slane %v326_v36, 2  ;;  %v342_v38 = vpop.xlane.xlu1 %341 }
 0x1a7   :  { %v343_v39 = vrot.slane %v342_v38, 4 }
 0x1a8   :  { %v328_v40 = vadd.f32 %v327_v37, %v326_v36 }
 0x1a9   :  { %v344_v42 = vadd.f32 %v343_v39, %v342_v38 }
 0x1aa   :  { %v329_v43 = vrot.slane %v328_v40, 1 }
 0x1ab   :  { %v345_v15 = vrot.slane %v344_v42, 2 }
 0x1ac   :  { %v330_v44 = vadd.f32 %v329_v43, %v328_v40 }
 0x1ad   :  { %v346_v16 = vadd.f32 %v345_v15, %v344_v42 }
 0x1ae   :  { %1150 = vpush %v330_v44 }
 0x1af   :  { %v347_v46 = vrot.slane %v346_v16, 1 }
 0x1b1   :  { %v348_v49 = vadd.f32 %v347_v46, %v346_v16 }
 0x1b3   :  { %1152 = vpush %v348_v49 }
 0x1b4   :  { %v1048_v51 = vpop.f32.mrb[2].mxu0  ;;  %v1083_v52 = vpop.f32.mrb[2].mxu1  ;;  %1154 = vpush %v366_v48 }
 0x1b5   :  { %v1049_v54 = vpop.f32.mrb[3].mxu0  ;;  %v1084_v55 = vpop.f32.mrb[3].mxu1 }
 0x1b6   :  { %v1050_v57 = vadd.f32 %v1049_v54, %v1048_v51  ;;  %v1085_v5 = vadd.f32 %v1084_v55, %v1083_v52 }
 0x1b8   :  { %v812_v8 = vadd.f32 %v1085_v5, %v1050_v57 }
 0x1ba   :  { %v822_v59 = vmul.f32 %v820_v53, %v812_v8 }
 0x1bc   :  { %v825_v60 = vsub.f32 %v822_v59, %v824_v58 }
 0x1be   :  { %v826_v61 = vand.u32 2147483647, %v825_v60 }
 0x1c0   :  { %v828_v62 = vsel %vm827_vm8, %v826_v61, 0.0 }
 0x1c1   :  { %829 = vadd.xlane.f32.xlu1 %v828_v62 }
 0x1c5   :  { %842 = vadd.xlane.f32.xlu1 %v841_v63 }
 0x1df   :  { %s1151_s5 = spop %1150 }
 0x1e0   :  { %333 = sst [smem:[#allocation2]] %s1151_s5 }
 0x1e4   :  { %s1153_s19 = spop %1152 }
 0x1e5   :  { %351 = sst [smem:[#allocation2 + $0x1]] %s1153_s19  ;;  %s1155_s20 = spop %1154 }
 0x1e6   :  { %369 = sst [smem:[#allocation2 + $0x2]] %s1155_s20 }
 0x24e   :  { %v830_v0 = vpop.xlane.xlu1 %829 }
 0x24f   :  { %v831_v9 = vrot.slane %v830_v0, 4 }
 0x251   :  { %v832_v2 = vadd.f32 %v831_v9, %v830_v0 }
 0x252   :  { %v843_v1 = vpop.xlane.xlu1 %842 }
 0x253   :  { %v833_v3 = vrot.slane %v832_v2, 2  ;;  %v844_v17 = vrot.slane %v843_v1, 4 }
 0x255   :  { %v845_v4 = vadd.f32 %v844_v17, %v843_v1  ;;  %v834_v6 = vadd.f32 %v833_v3, %v832_v2 }
 0x257   :  { %v846_v7 = vrot.slane %v845_v4, 2  ;;  %v835_v18 = vrot.slane %v834_v6, 1 }
 0x259   :  { %v847_v10 = vadd.f32 %v846_v7, %v845_v4  ;;  %v836_v11 = vadd.f32 %v835_v18, %v834_v6 }
 0x25b   :  { %1156 = vpush %v836_v11  ;;  %v848_v12 = vrot.slane %v847_v10, 1 }
 0x25d   :  { %v849_v13 = vadd.f32 %v848_v12, %v847_v10 }
 0x25f   :  { %1158 = vpush %v849_v13 }
 0x28c   :  { %s1157_s6 = spop %1156 }
 0x28d   :  { %839 = sst [smem:[#allocation2 + $0x3]] %s1157_s6 }
 0x290   :  { %s1159_s24 = spop %1158 }
 0x291   :  { %s851_s25 = smul.f32 2.0, %s1159_s24 }
 0x293   :  { %853 = sst [smem:[#allocation2 + $0x4]] %s851_s25 }
 0x294   :  { %1211 = shalt.err (!%p1208_p4)
}
 0x295   :  { %s1218_s27 = smov [#allocation2]  }
 0x296   :  { %865 = dma.smem_to_vmem %s1218_s27, 16, %s863_s23, [#allocation3]  }
 0x297   :  { %1212 = dma.done.wait [#allocation3], 16  }
 0x298   :  { %1213 = vsyncadd [#allocation3], 4294967280 }
 0x299   :  { %871 = sfence }
 0x29a   :  { %872 = vsyncpa [#allocation3], 1 }

// kernel: ctdet_loss.3
= control target key start
LH: loop header
LB: loop body
LE: loop exit
PB: predicated region body
PF: predicated region fallthrough
CT: control target
= control target key end

     0   :  { %s2750_s0 = inlined_call_operand.vmem [shape: f32[2,1,16,16], index: 0, kind: input, shape index: {}]   ;;  %s2751_s1 = inlined_call_operand.vmem [shape: f32[512,16], index: 1, kind: input, shape index: {}]   ;;  %s2752_s2 = inlined_call_operand.hbm [shape: f32[16,512], index: 2, kind: input, shape index: {}]   ;;  %s2753_s3 = inlined_call_operand.hbm [shape: f32[2,1,512,512], index: 3, kind: input, shape index: {}]   ;;  %s2754_s4 = inlined_call_operand.vmem [shape: f32[2,1,8,128], index: 4, kind: output, shape index: {}]  }
   0x1   :  { %2762 = sst [smem:[#allocation9_spill]] %s2752_s2 }
   0x2   :  { %2763 = sst [smem:[#allocation10_spill]] %s2754_s4 }
   0x3   :  { %9 = vsyncpa [#allocation3], 0 }
   0x4   :  { %10 = vsyncpa [#allocation5], 0 }
   0x5   :  { %12 = vsyncpa [#allocation5 + $0x1], 0  ;;  %s1989_s15 = smov 0   ;;  %s1991_s16 = smov 0  }
   0x6   :  { %s1993_s17 = smov 0   ;;  %s1995_s18 = smov 0  }
   0x7   :  { %s1997_s19 = smov 0   ;;  %s1999_s20 = smov 0  }
   0x8   :  { %s2001_s21 = smov 0   ;;  %s2003_s22 = smov 0  }
   0x9 LB: > { %s1603_s23 = sadd.s32 4294967295, %s1956_s22   ;;  %p136_p0 = scmp.ne.s32.totalorder %s1932_s16, %s1928_s15  ;;  %s1956_s22 = sphi %s2003_s22, %s18_s22   ;;  %s1952_s21 = sphi %s2001_s21, %s2865_s21   ;;  %s1948_s20 = sphi %s1999_s20, %s2864_s20   ;;  %s1944_s19 = sphi %s1997_s19, %s2863_s19   ;;  %s1940_s18 = sphi %s1995_s18, %s2862_s18   ;;  %s1936_s17 = sphi %s1993_s17, %s2861_s17   ;;  %s1932_s16 = sphi %s1991_s16, %s2860_s16   ;;  %s1928_s15 = sphi %s1989_s15, %s2859_s15  }
   0xa   : > { %p2029_p1 = scmp.eq.s32.totalorder %s1603_s23, 0  ;;  %p1605_p2 = scmp.ge.s32.totalorder %s1956_s22, 1 }
   0xb   : > { %p175_p3 = scmp.lt.s32.totalorder %s1956_s22, 9  ;;  %s1958_s27 = smov [#allocation2]  }
   0xc   : > { %s2764_s24 = scalar_select %p2029_p1, 1, 0 }
   0xd   : > { %p2037_p4 = por %p2029_p1, %p136_p0  ;;  %p2041_p5 = pnand %p1605_p2, %p175_p3 }
   0xe   : > { %s187_s28 = sshll.u32 %s1958_s27, 4  ;;  %s2768_s2 = sld [smem:[#allocation9_spill]]  ;;  %s188_s28 = int_to_ptr.vmem [resolvable:$true] %s187_s28 }
   0xf   : > { %s2765_s25 = scalar_select %p2037_p4, 1, 0 }
  0x10   : > { %s2766_s26 = scalar_select %p2041_p5, 1, 0 }
  0x11   : > { %p1748_p6 = pneg %p2041_p5 }
  0x13   : > { %p2049_p7 = pnand %p1748_p6, %p2029_p1 }
  0x14   : > { %s1828_s6 = scalar_lea.hbm %s2768_s2, 1024 }
  0x15   : > { %p1829_p8 = scmp.ne.s32.totalorder %s2768_s2, %s1828_s6  ;;  %p1830_p9 = pneg %p2049_p7 }
  0x16   : > { %p1835_p12 = scmp.lt.u32.totalorder %s1828_s6, %s2768_s2 }
  0x17   : > { %p1831_p10 = pnand %p1830_p9, %p1829_p8 }
  0x19   : > { %p1832_p11 = pneg %p1831_p10 }
  0x1b   : > { %p1837_p13 = pnand %p1835_p12, %p1832_p11 }
  0x1d   : > { %1840 = shalt.err (!%p1837_p13)
}
  0x1e   : > { %s1841_s11 = scalar_lea.vmem %s188_s28, 1024  ;;  %p1849_p6 = scmp.lt.s32.totalorder %s188_s28, %s188_s28 }
  0x1f   : > { %p1842_p0 = scmp.ne.s32.totalorder %s188_s28, %s1841_s11  ;;  %p1850_p4 = scmp.lt.s32.totalorder %s1841_s11, %s1841_s11 }
  0x21   : > { %p1844_p2 = pnand %p1842_p0, %p1830_p9  ;;  %p1851_p1 = por %p1850_p4, %p1849_p6 }
  0x23   : > { %p1845_p3 = pneg %p1844_p2 }
  0x25   : > { %p1852_p5 = pnand %p1851_p1, %p1845_p3 }
  0x27   : > { %1855 = shalt.err (!%p1852_p5)
}
  0x28   : > { %s2759_s12 = smov 512   ;;  %s2760_s13 = smov 32  }
  0x29   : > { %1751 = dma.hbm_to_vmem [thread:$0]  (!%p2049_p7), %s2768_s2, 1024, %s188_s28, [#allocation3], %s2759_s12, %s2759_s12, %s2760_s13  }
  0x2a   : > { %s30_s23 = sadd.s32 1, %s1948_s20  ;;  %s37_s27 = sadd.s32 1, %s1952_s21 }
  0x2b   : > { %p31_p1 = scmp.ge.s32.totalorder %s30_s23, 4  ;;  %s123_s30 = sadd.s32 1, %s1936_s17 }
  0x2c   : > { %p130_p4 = scmp.ne.s32.totalorder %s1936_s17, %s1932_s16  ;;  %p131_p5 = scmp.eq.s32.totalorder %s1956_s22, 0 }
  0x2d   : > { %s2867_s23 = smov (%p31_p1, %s30_s23), 0  ;;  %s2869_s27 = smov (!%p31_p1, %s37_s27), %s1952_s21 }
  0x2e   : > { %2769 = sst [smem:[#allocation8_spill]] %s2867_s23  ;;  %s119_s29 = ssub.s32 %s1948_s20, %s2867_s23 }
  0x2f   : > { %p39_p8 = scmp.ge.s32.totalorder %s2869_s27, 2  ;;  %p1757_p9 = scmp.lt.s32.totalorder %s1956_s22, 8 }
  0x30   : > { %p2084_p10 = por %p131_p5, %p130_p4  ;;  %s222_s28 = sand.u32 1, %s1936_s17  }
  0x31   : > { %s2871_s27 = smov (%p39_p8, %s2869_s27), 0  ;;  %s1608_s6 = sshll.u32 %s222_s28, 9 }
  0x32   : > { %s116_s7 = ssub.s32 %s1952_s21, %s2871_s27  ;;  %s1724_s9 = sshll.u32 %s1948_s20, 6 }
  0x33   : > { %s120_s8 = sor.u32 %s119_s29, %s116_s7  ;;  %s1611_s10 = sshll.u32 %s1952_s21, 8 }
  0x34   : > { %p121_p7 = scmp.eq.s32.totalorder %s120_s8, 0  ;;  %s235_s11 = sadd.s32 %s1724_s9, %s1611_s10 }
  0x35   : > { %s226_s14 = scalar_lea.vmem [#allocation4], %s1608_s6  ;;  %s1612_s13 = sshll.u32 %s235_s11, 7 }
  0x36   : > { %s238_s15 = sshll.u32 %s226_s14, 4  ;;  %s2103_s4 = scalar_lea.hbm %s2753_s3, %s1612_s13  ;;  %s2098_s15 = int_to_ptr.vmem [resolvable:$true] %s238_s15 }
  0x37   : > { %s2096_s12 = scalar_select %p121_p7, %s1936_s17, %s123_s30  }
  0x38   : > { %p2109_p11 = pnand %p1757_p9, %p2084_p10  ;;  %s2113_s30 = scalar_lea.sflag [#allocation5], %s222_s28 }
  0x39   : > { %s1856_s6 = scalar_lea.hbm %s2103_s4, 8192  ;;  %s1861_s23 = scalar_lea.hbm %s2753_s3, 65536 }
  0x3a   : > { %p1857_p12 = scmp.ne.s32.totalorder %s2103_s4, %s1856_s6  ;;  %p1858_p13 = pneg %p2109_p11 }
  0x3b   : > { %p1862_p3 = scmp.lt.u32.totalorder %s2103_s4, %s2753_s3  ;;  %p1863_p6 = scmp.lt.u32.totalorder %s1861_s23, %s1856_s6 }
  0x3c   : > { %p1859_p0 = pnand %p1858_p13, %p1857_p12  ;;  %p1865_p4 = scmp.lt.u32.totalorder %s1856_s6, %s2103_s4 }
  0x3d   : > { %p1864_p1 = por %p1863_p6, %p1862_p3 }
  0x3e   : > { %p1860_p2 = pneg %p1859_p0 }
  0x3f   : > { %p1866_p5 = por %p1865_p4, %p1864_p1 }
  0x41   : > { %p1867_p8 = pnand %p1866_p5, %p1860_p2 }
  0x43   : > { %1870 = shalt.err (!%p1867_p8)
}
  0x44   : > { %s1871_s28 = scalar_lea.vmem %s2098_s15, 8192  ;;  %s1961_s8 = smov [#allocation4]  }
  0x45   : > { %p1872_p9 = scmp.ne.s32.totalorder %s2098_s15, %s1871_s28  ;;  %s1876_s9 = sshll.u32 %s1961_s8, 4  ;;  %s1877_s9 = int_to_ptr.vmem [resolvable:$false] %s1876_s9 }
  0x46   : > { %s1878_s10 = scalar_lea.vmem %s1877_s9, 16384  ;;  %p1879_p12 = scmp.lt.s32.totalorder %s2098_s15, %s1877_s9 }
  0x47   : > { %p1874_p10 = pnand %p1872_p9, %p1858_p13  ;;  %p1880_p0 = scmp.lt.s32.totalorder %s1878_s10, %s1871_s28 }
  0x49   : > { %p1875_p7 = pneg %p1874_p10  ;;  %p1881_p3 = por %p1880_p0, %p1879_p12 }
  0x4b   : > { %p1882_p6 = pnand %p1881_p3, %p1875_p7 }
  0x4d   : > { %1885 = shalt.err (!%p1882_p6)
}
  0x4e   : > { %s2772_s11 = smov 32   ;;  %s2773_s14 = smov 512  }
  0x4f   : > { %1755 = dma.hbm_to_vmem [thread:$0]  (!%p2109_p11), %s2103_s4, 8192, %s2098_s15, %s2113_s30, %s2773_s14, %s2773_s14, %s2772_s11  }
  0x50   : > { %p2774_p13 = scmp.ne.s32.totalorder %s2766_s26, 0 }
  0x51   : > { %p2775_p2 = scmp.ne.s32.totalorder (!%p2774_p13), %s2764_s24, 0 }
  0x52   : > { %250 = sbr.rel (%p2774_p13) target bundleno = 688 (0x2b0), region = 36 }
  0x59   : > { %1919 = dma.done.wait (%p2775_p2), [#allocation3], 1024  }
  0x5a   : > { %1921 = vsyncadd (%p2775_p2), [#allocation3], 4294966272  ;;  %s256_s6 = sand.u32 1, %s1932_s16   ;;  %p2776_p1 = scmp.ne.s32.totalorder %s2765_s25, 0 }
  0x5b   : > { %s1615_s29 = sshll.u32 %s256_s6, 9  ;;  %s257_s2 = scalar_lea.sflag [#allocation5], %s256_s6 }
  0x5c   : > { %s2151_s13 = scalar_lea.vmem [#allocation4], %s1615_s29 }
  0x5d   : > { %1923 = dma.done.wait (%p2776_p1), %s257_s2, 8192  }
  0x5e   : > { %1925 = vsyncadd (%p2776_p1), %s257_s2, 4294959104  ;;  %p301_p11 = scmp.lt.s32.totalorder %s1944_s19, 1  ;;  %s1618_s4 = sshll.u32 %s1940_s18, 4 }
  0x5f   : > { %p311_p4 = scmp.lt.s32.totalorder %s1618_s4, 63  ;;  %s2777_s10 = sld [smem:[#allocation10_spill]] }
  0x60   : > { %s2873_s19 = smov (!%p301_p11, %s1944_s19), 1  ;;  %p1621_p5 = scmp.ne.s32.totalorder %s1940_s18, 0 }
  0x61   : > { %s2875_s4 = smov (!%p311_p4, %s1618_s4), 63  ;;  %s1725_s24 = sshll.u32 %s2873_s19, 4  ;;  %v1962_v0 = vmov (!%p1621_p5), 0.0  }
  0x62   : > { %s1620_s26 = sshll.u32 %s2873_s19, 3  ;;  %s2163_s23 = scalar_lea.vmem %s2750_s0, %s1725_s24 }
  0x63   : > { %s1619_s5 = sshll.u32 %s2875_s4, 3  ;;  %327 = sbr.rel (%p1621_p5) target bundleno = 106 (0x6a), region = 48 }
  0x64   : > { %s2168_s25 = scalar_lea.vmem %s2751_s1, %s1619_s5 }
  0x65   : > { %s2173_s11 = scalar_lea.vmem %s2777_s10, %s1620_s26 }
  0x66   : > { %328 = vst [vmem:[%s2173_s11] sm:$0xff] (!%p1621_p5), %v1962_v0 }
  0x6a PF: > { %v332_v1 = vld [vmem:[#allocation2 + $0x8] sm:$0xff]  ;;  %v334_v3 = vld [vmem:[#allocation2 + $0x18] sm:$0xff]  ;;  %v331_v6 = vld [vmem:[#allocation2] sm:$0xff]  ;;  %v1963_v8 = vmov 0.0   ;;  %vm339_vm0 = vcmask 130048  }
  0x6b   : > { %v336_v2 = vld [vmem:[#allocation2 + $0x28] sm:$0xff]  ;;  %v338_v5 = vld [vmem:[#allocation2 + $0x38] sm:$0xff]  ;;  %v335_v7 = vld [vmem:[#allocation2 + $0x20] sm:$0xff]  ;;  %410 = vmatprep.mubr.f32.mxu0 %v1963_v8  ;;  %487 = vmatprep.mubr.f32.mxu1 %v1963_v8 }
  0x6c   : > { %v1726_v4 = vpack.c.bf16 %v336_v2, %v332_v1  ;;  %v1730_v9 = vpack.c.bf16 %v338_v5, %v334_v3  ;;  %v1728_v10 = vpack.c.bf16 %v335_v7, %v331_v6  ;;  %v333_v11 = vld [vmem:[#allocation2 + $0x10] sm:$0xff]  ;;  %v329_v14 = vld [vmem:[%s2163_s23] sm:$0xff]  ;;  %v330_v15 = vld [vmem:[%s2163_s23 + $0x8] sm:$0xff] }
  0x6d   : > { %v337_v12 = vld [vmem:[#allocation2 + $0x30] sm:$0xff]  ;;  %v500_v28 = vld [vmem:[%s2168_s25] sm:$0xff]  ;;  %v501_v29 = vld [vmem:[%s2168_s25 + $0x8] sm:$0xff] }
  0x6e   : > { %1727 = vmatprep.subr.bf16.mxu0 %v1726_v4  ;;  %v1732_v13 = vpack.c.bf16 %v337_v12, %v333_v11  ;;  %1731 = vmatprep.subr.bf16.mxu1 %v1730_v9  ;;  %v502_v30 = vld [vmem:[%s2168_s25 + $0x10] sm:$0xff]  ;;  %v503_v31 = vld [vmem:[%s2168_s25 + $0x18] sm:$0xff]  ;;  %v504_v32 = vld [vmem:[%s2168_s25 + $0x20] sm:$0xff] }
  0x6f   : > { %1729 = vmatpush1.bf16.msra.mxu0 %v1728_v10  ;;  %v505_v33 = vld [vmem:[%s2168_s25 + $0x28] sm:$0xff]  ;;  %v506_v34 = vld [vmem:[%s2168_s25 + $0x30] sm:$0xff]  ;;  %v507_v35 = vld [vmem:[%s2168_s25 + $0x38] sm:$0xff] }
  0x70   : > { %1733 = vmatpush1.bf16.msra.mxu1 %v1732_v13  ;;  %v508_v36 = vld [vmem:[%s2168_s25 + $0x40] sm:$0xff]  ;;  %v509_v37 = vld [vmem:[%s2168_s25 + $0x48] sm:$0xff]  ;;  %v510_v38 = vld [vmem:[%s2168_s25 + $0x50] sm:$0xff] }
  0x71   : > { %v511_v39 = vld [vmem:[%s2168_s25 + $0x58] sm:$0xff]  ;;  %v512_v40 = vld [vmem:[%s2168_s25 + $0x60] sm:$0xff]  ;;  %v513_v41 = vld [vmem:[%s2168_s25 + $0x68] sm:$0xff] }
  0x72   : > { %1622 = vmatmul.mubr.msk.f32.vlgmr.msra.gmra.mrb[0].mxu0 %vm339_vm0, %v329_v14  ;;  %v514_v42 = vld [vmem:[%s2168_s25 + $0x70] sm:$0xff]  ;;  %v515_v43 = vld [vmem:[%s2168_s25 + $0x78] sm:$0xff]  ;;  %v886_v44 = vld [vmem:[%s2151_s13] sm:$0xff] }
  0x73   : > { %1624 = vmatmul.mubr.msk.f32.vlgmr.msra.gmra.mrb[0].mxu1 %vm339_vm0, %v329_v14  ;;  %416 = vmatprep.mubr.f32.mxu0 %v1963_v8  ;;  %v887_v45 = vld [vmem:[%s2151_s13 + $0x8] sm:$0xff]  ;;  %v888_v46 = vld [vmem:[%s2151_s13 + $0x10] sm:$0xff]  ;;  %v889_v51 = vld [vmem:[%s2151_s13 + $0x18] sm:$0xff] }
  0x74   : > { %493 = vmatprep.mubr.f32.mxu1 %v1963_v8  ;;  %v890_v53 = vld [vmem:[%s2151_s13 + $0x20] sm:$0xff]  ;;  %v891_v4 = vld [vmem:[%s2151_s13 + $0x28] sm:$0xff] }
  0x76   : > { %1623 = vmatmul.mubr.msk.f32.gmra.mrb[2].mxu0 %vm339_vm0, %v330_v15 }
  0x77   : > { %1625 = vmatmul.mubr.msk.f32.gmra.mrb[2].mxu1 %vm339_vm0, %v330_v15  ;;  %628 = vmatprep.mubr.f32.mxu0 %v1963_v8 }
  0x78   : > { %789 = vmatprep.mubr.f32.mxu1 %v1963_v8 }
 0x145   : > { %v412_v16 = vpop.f32.mrb[0].mxu0 }
 0x146   : > { %v414_v17 = vpop.f32.mrb[1].mxu0  ;;  %v489_v18 = vpop.f32.mrb[0].mxu1 }
 0x147   : > { %v491_v19 = vpop.f32.mrb[1].mxu1 }
 0x149   : > { %v418_v20 = vpop.f32.mrb[2].mxu0 }
 0x14a   : > { %v1736_v21 = vpack.c.bf16 %v418_v20, %v412_v16  ;;  %v495_v22 = vpop.f32.mrb[2].mxu1  ;;  %v420_v23 = vpop.f32.mrb[3].mxu0 }
 0x14b   : > { %v1740_v24 = vpack.c.bf16 %v495_v22, %v489_v18  ;;  %v1734_v25 = vpack.c.bf16 %v420_v23, %v414_v17  ;;  %v497_v26 = vpop.f32.mrb[3].mxu1  ;;  %v892_v18 = vld [vmem:[%s2151_s13 + $0x30] sm:$0xff] }
 0x14c   : > { %v1738_v27 = vpack.c.bf16 %v497_v26, %v491_v19 }
 0x14d   : > { %1735 = vmatprep.subr.bf16.mxu0 %v1734_v25 }
 0x14e   : > { %1739 = vmatprep.subr.bf16.mxu1 %v1738_v27  ;;  %1737 = vmatpush1.bf16.msra.mxu0 %v1736_v21 }
 0x14f   : > { %1741 = vmatpush1.bf16.msra.mxu1 %v1740_v24 }
 0x151   : > { %1626 = vmatmul.mubr.msk.f32.vlgmr.msra.gmra.mrb[4].mxu0 %vm339_vm0, %v500_v28 }
 0x152   : > { %634 = vmatprep.mubr.f32.mxu0 %v1963_v8  ;;  %1642 = vmatmul.mubr.msk.f32.vlgmr.msra.gmra.mrb[4].mxu1 %vm339_vm0, %v500_v28 }
 0x153   : > { %795 = vmatprep.mubr.f32.mxu1 %v1963_v8 }
 0x155   : > { %1627 = vmatmul.mubr.msk.f32.gmra.mrb[6].mxu0 %vm339_vm0, %v501_v29 }
 0x156   : > { %640 = vmatprep.mubr.f32.mxu0 %v1963_v8  ;;  %1643 = vmatmul.mubr.msk.f32.gmra.mrb[6].mxu1 %vm339_vm0, %v501_v29 }
 0x157   : > { %801 = vmatprep.mubr.f32.mxu1 %v1963_v8 }
 0x159   : > { %1628 = vmatmul.mubr.msk.f32.gmra.mrb[8].mxu0 %vm339_vm0, %v502_v30 }
 0x15a   : > { %646 = vmatprep.mubr.f32.mxu0 %v1963_v8  ;;  %1644 = vmatmul.mubr.msk.f32.gmra.mrb[8].mxu1 %vm339_vm0, %v502_v30 }
 0x15b   : > { %807 = vmatprep.mubr.f32.mxu1 %v1963_v8 }
 0x15d   : > { %1629 = vmatmul.mubr.msk.f32.gmra.mrb[10].mxu0 %vm339_vm0, %v503_v31 }
 0x15e   : > { %652 = vmatprep.mubr.f32.mxu0 %v1963_v8  ;;  %1645 = vmatmul.mubr.msk.f32.gmra.mrb[10].mxu1 %vm339_vm0, %v503_v31 }
 0x15f   : > { %813 = vmatprep.mubr.f32.mxu1 %v1963_v8 }
 0x161   : > { %1630 = vmatmul.mubr.msk.f32.gmra.mrb[12].mxu0 %vm339_vm0, %v504_v32 }
 0x162   : > { %658 = vmatprep.mubr.f32.mxu0 %v1963_v8  ;;  %1646 = vmatmul.mubr.msk.f32.gmra.mrb[12].mxu1 %vm339_vm0, %v504_v32 }
 0x163   : > { %819 = vmatprep.mubr.f32.mxu1 %v1963_v8 }
 0x165   : > { %1631 = vmatmul.mubr.msk.f32.gmra.mrb[14].mxu0 %vm339_vm0, %v505_v33 }
 0x166   : > { %664 = vmatprep.mubr.f32.mxu0 %v1963_v8  ;;  %1647 = vmatmul.mubr.msk.f32.gmra.mrb[14].mxu1 %vm339_vm0, %v505_v33 }
 0x167   : > { %825 = vmatprep.mubr.f32.mxu1 %v1963_v8 }
 0x169   : > { %1632 = vmatmul.mubr.msk.f32.gmra.mrb[16].mxu0 %vm339_vm0, %v506_v34 }
 0x16a   : > { %670 = vmatprep.mubr.f32.mxu0 %v1963_v8  ;;  %1648 = vmatmul.mubr.msk.f32.gmra.mrb[16].mxu1 %vm339_vm0, %v506_v34 }
 0x16b   : > { %831 = vmatprep.mubr.f32.mxu1 %v1963_v8 }
 0x16d   : > { %1633 = vmatmul.mubr.msk.f32.gmra.mrb[18].mxu0 %vm339_vm0, %v507_v35 }
 0x16e   : > { %676 = vmatprep.mubr.f32.mxu0 %v1963_v8  ;;  %1649 = vmatmul.mubr.msk.f32.gmra.mrb[18].mxu1 %vm339_vm0, %v507_v35  ;;  %v894_v35 = vld [vmem:[%s2151_s13 + $0x40] sm:$0xff] }
 0x16f   : > { %837 = vmatprep.mubr.f32.mxu1 %v1963_v8 }
 0x171   : > { %1634 = vmatmul.mubr.msk.f32.gmra.mrb[20].mxu0 %vm339_vm0, %v508_v36 }
 0x172   : > { %682 = vmatprep.mubr.f32.mxu0 %v1963_v8  ;;  %1650 = vmatmul.mubr.msk.f32.gmra.mrb[20].mxu1 %vm339_vm0, %v508_v36  ;;  %v895_v36 = vld [vmem:[%s2151_s13 + $0x48] sm:$0xff] }
 0x173   : > { %843 = vmatprep.mubr.f32.mxu1 %v1963_v8 }
 0x175   : > { %1635 = vmatmul.mubr.msk.f32.gmra.mrb[22].mxu0 %vm339_vm0, %v509_v37 }
 0x176   : > { %688 = vmatprep.mubr.f32.mxu0 %v1963_v8  ;;  %1651 = vmatmul.mubr.msk.f32.gmra.mrb[22].mxu1 %vm339_vm0, %v509_v37  ;;  %v893_v37 = vld [vmem:[%s2151_s13 + $0x38] sm:$0xff] }
 0x177   : > { %849 = vmatprep.mubr.f32.mxu1 %v1963_v8 }
 0x179   : > { %1636 = vmatmul.mubr.msk.f32.gmra.mrb[24].mxu0 %vm339_vm0, %v510_v38 }
 0x17a   : > { %694 = vmatprep.mubr.f32.mxu0 %v1963_v8  ;;  %1652 = vmatmul.mubr.msk.f32.gmra.mrb[24].mxu1 %vm339_vm0, %v510_v38 }
 0x17b   : > { %855 = vmatprep.mubr.f32.mxu1 %v1963_v8 }
 0x17d   : > { %1637 = vmatmul.mubr.msk.f32.gmra.mrb[26].mxu0 %vm339_vm0, %v511_v39 }
 0x17e   : > { %700 = vmatprep.mubr.f32.mxu0 %v1963_v8  ;;  %1653 = vmatmul.mubr.msk.f32.gmra.mrb[26].mxu1 %vm339_vm0, %v511_v39 }
 0x17f   : > { %861 = vmatprep.mubr.f32.mxu1 %v1963_v8 }
 0x181   : > { %1638 = vmatmul.mubr.msk.f32.gmra.mrb[28].mxu0 %vm339_vm0, %v512_v40 }
 0x182   : > { %706 = vmatprep.mubr.f32.mxu0 %v1963_v8  ;;  %1654 = vmatmul.mubr.msk.f32.gmra.mrb[28].mxu1 %vm339_vm0, %v512_v40 }
 0x183   : > { %867 = vmatprep.mubr.f32.mxu1 %v1963_v8 }
 0x185   : > { %1639 = vmatmul.mubr.msk.f32.gmra.mrb[30].mxu0 %vm339_vm0, %v513_v41 }
 0x186   : > { %712 = vmatprep.mubr.f32.mxu0 %v1963_v8  ;;  %1655 = vmatmul.mubr.msk.f32.gmra.mrb[30].mxu1 %vm339_vm0, %v513_v41 }
 0x187   : > { %873 = vmatprep.mubr.f32.mxu1 %v1963_v8 }
 0x189   : > { %1640 = vmatmul.mubr.msk.f32.gmra.mrb[32].mxu0 %vm339_vm0, %v514_v42 }
 0x18a   : > { %718 = vmatprep.mubr.f32.mxu0 %v1963_v8  ;;  %1656 = vmatmul.mubr.msk.f32.gmra.mrb[32].mxu1 %vm339_vm0, %v514_v42 }
 0x18b   : > { %879 = vmatprep.mubr.f32.mxu1 %v1963_v8  ;;  %v899_v8 = vld [vmem:[%s2151_s13 + $0x68] sm:$0xff] }
 0x18d   : > { %1641 = vmatmul.mubr.msk.f32.gmra.mrb[34].mxu0 %vm339_vm0, %v515_v43 }
 0x18e   : > { %1657 = vmatmul.mubr.msk.f32.gmra.mrb[34].mxu1 %vm339_vm0, %v515_v43 }
 0x224   : > { %v630_v47 = vpop.f32.mrb[4].mxu0 }
 0x225   : > { %v950_v48 = vsub.f32 %v630_v47, %v886_v44  ;;  %v632_v49 = vpop.f32.mrb[5].mxu0  ;;  %v791_v50 = vpop.f32.mrb[4].mxu1 }
 0x226   : > { %v951_v52 = vsub.f32 %v632_v49, %v887_v45  ;;  %v952_v54 = vsub.f32 %v791_v50, %v888_v46  ;;  %v793_v55 = vpop.f32.mrb[5].mxu1 }
 0x227   : > { %v1014_v56 = vand.u32 2147483647, %v950_v48  ;;  %v1142_v57 = vmul.f32 0.5, %v950_v48  ;;  %v953_v62 = vsub.f32 %v793_v55, %v889_v51 }
 0x228   : > { %v1015_v58 = vand.u32 2147483647, %v951_v52  ;;  %v1143_v59 = vmul.f32 0.5, %v951_v52  ;;  %v636_v60 = vpop.f32.mrb[6].mxu0  ;;  %v1016_v61 = vand.u32 2147483647, %v952_v54 }
 0x229   : > { %vm2272_vm1 = vcmp.lt.f32.partialorder %v1014_v56, 1.0  ;;  %v1206_v0 = vmul.f32 %v1142_v57, %v950_v48  ;;  %v1658_v1 = vadd.f32 -0.5, %v1014_v56  ;;  %v954_v2 = vsub.f32 %v636_v60, %v890_v53  ;;  %v638_v3 = vpop.f32.mrb[7].mxu0  ;;  %v797_v5 = vpop.f32.mrb[6].mxu1 }
 0x22a   : > { %vm1079_vm2 = vcmp.lt.f32.partialorder %v1015_v58, 1.0  ;;  %v1207_v6 = vmul.f32 %v1143_v59, %v951_v52  ;;  %v1659_v7 = vadd.f32 -0.5, %v1015_v58  ;;  %vm2277_vm3 = vcmp.lt.f32.partialorder %v1016_v61, 1.0  ;;  %v799_v9 = vpop.f32.mrb[7].mxu1 }
 0x22b   : > { %v1334_v10 = vsel %vm2272_vm1, %v1206_v0, %v1658_v1  ;;  %v1018_v11 = vand.u32 2147483647, %v954_v2  ;;  %v1146_v12 = vmul.f32 0.5, %v954_v2  ;;  %v1144_v13 = vmul.f32 0.5, %v952_v54 }
 0x22c   : > { %v1335_v14 = vsel %vm1079_vm2, %v1207_v6, %v1659_v7  ;;  %v1660_v15 = vadd.f32 -0.5, %v1016_v61  ;;  %v955_v16 = vsub.f32 %v638_v3, %v891_v4  ;;  %v1017_v17 = vand.u32 2147483647, %v953_v62  ;;  %v642_v19 = vpop.f32.mrb[8].mxu0  ;;  %v896_v61 = vld [vmem:[%s2151_s13 + $0x50] sm:$0xff]  ;;  %v898_v7 = vld [vmem:[%s2151_s13 + $0x60] sm:$0xff] }
 0x22d   : > { %v1398_v20 = vadd.f32 %v1335_v14, %v1334_v10  ;;  %vm2284_vm4 = vcmp.lt.f32.partialorder %v1018_v11, 1.0  ;;  %v1210_v22 = vmul.f32 %v1146_v12, %v954_v2  ;;  %v1662_v23 = vadd.f32 -0.5, %v1018_v11  ;;  %v644_v24 = vpop.f32.mrb[9].mxu0  ;;  %v2288_v25 = vpop.f32.mrb[8].mxu1 }
 0x22e   : > { %v1208_v26 = vmul.f32 %v1144_v13, %v952_v54  ;;  %v1019_v27 = vand.u32 2147483647, %v955_v16  ;;  %v1147_v28 = vmul.f32 0.5, %v955_v16  ;;  %vm2290_vm5 = vcmp.lt.f32.partialorder %v1017_v17, 1.0  ;;  %v2294_v30 = vpop.f32.mrb[9].mxu1 }
 0x22f   : > { %v1338_v31 = vsel %vm2284_vm4, %v1210_v22, %v1662_v23  ;;  %v1145_v32 = vmul.f32 0.5, %v953_v62  ;;  %v1661_v33 = vadd.f32 -0.5, %v1017_v17  ;;  %v956_v34 = vsub.f32 %v797_v5, %v892_v18 }
 0x230   : > { %v1336_v38 = vsel %vm2277_vm3, %v1208_v26, %v1660_v15  ;;  %vm1083_vm6 = vcmp.lt.f32.partialorder %v1019_v27, 1.0  ;;  %v1211_v39 = vmul.f32 %v1147_v28, %v955_v16  ;;  %v1663_v40 = vadd.f32 -0.5, %v1019_v27  ;;  %v648_v41 = vpop.f32.mrb[10].mxu0  ;;  %v897_v15 = vld [vmem:[%s2151_s13 + $0x58] sm:$0xff]  ;;  %v900_v16 = vld [vmem:[%s2151_s13 + $0x70] sm:$0xff] }
 0x231   : > { %v1414_v42 = vadd.f32 %v1398_v20, %v1336_v38  ;;  %v1209_v43 = vmul.f32 %v1145_v32, %v953_v62  ;;  %v1020_v44 = vand.u32 2147483647, %v956_v34  ;;  %v1148_v45 = vmul.f32 0.5, %v956_v34  ;;  %v650_v46 = vpop.f32.mrb[11].mxu0  ;;  %v809_v47 = vpop.f32.mrb[10].mxu1 }
 0x232   : > { %v1339_v48 = vsel %vm1083_vm6, %v1211_v39, %v1663_v40  ;;  %v958_v49 = vsub.f32 %v642_v19, %v894_v35  ;;  %v959_v50 = vsub.f32 %v644_v24, %v895_v36  ;;  %v957_v51 = vsub.f32 %v799_v9, %v893_v37  ;;  %v2303_v52 = vpop.f32.mrb[11].mxu1 }
 0x233   : > { %v1399_v53 = vadd.f32 %v1339_v48, %v1338_v31  ;;  %v1337_v54 = vsel %vm2290_vm5, %v1209_v43, %v1661_v33  ;;  %vm2307_vm7 = vcmp.lt.f32.partialorder %v1020_v44, 1.0  ;;  %v1212_v56 = vmul.f32 %v1148_v45, %v956_v34 }
 0x234   : > { %v1430_v57 = vadd.f32 %v1414_v42, %v1337_v54  ;;  %v1664_v58 = vadd.f32 -0.5, %v1020_v44  ;;  %v1022_v59 = vand.u32 2147483647, %v958_v49  ;;  %v1150_v60 = vmul.f32 0.5, %v958_v49  ;;  %v2312_v62 = vpop.f32.mrb[12].mxu0 }
 0x235   : > { %v1023_v63 = vand.u32 2147483647, %v959_v50  ;;  %v1151_v0 = vmul.f32 0.5, %v959_v50  ;;  %v1021_v1 = vand.u32 2147483647, %v957_v51  ;;  %v1149_v2 = vmul.f32 0.5, %v957_v51 }
 0x236   : > { %v1340_v3 = vsel %vm2307_vm7, %v1212_v56, %v1664_v58  ;;  %vm2316_vm8 = vcmp.lt.f32.partialorder %v1022_v59, 1.0  ;;  %v1214_v5 = vmul.f32 %v1150_v60, %v958_v49  ;;  %v1666_v6 = vadd.f32 -0.5, %v1022_v59  ;;  %v2322_v9 = vpop.f32.mrb[13].mxu0  ;;  %v2324_v10 = vpop.f32.mrb[12].mxu1  ;;  %v903_v59 = vld [vmem:[%s2151_s13 + $0x88] sm:$0xff]  ;;  %v901_v60 = vld [vmem:[%s2151_s13 + $0x78] sm:$0xff] }
 0x237   : > { %v1415_v11 = vadd.f32 %v1399_v53, %v1340_v3  ;;  %vm2326_vm9 = vcmp.lt.f32.partialorder %v1023_v63, 1.0  ;;  %v1215_v13 = vmul.f32 %v1151_v0, %v959_v50  ;;  %v1667_v14 = vadd.f32 -0.5, %v1023_v63  ;;  %v2332_v17 = vpop.f32.mrb[13].mxu1 }
 0x238   : > { %v1342_v18 = vsel %vm2316_vm8, %v1214_v5, %v1666_v6  ;;  %vm1085_vm10 = vcmp.lt.f32.partialorder %v1021_v1, 1.0  ;;  %v1213_v19 = vmul.f32 %v1149_v2, %v957_v51  ;;  %v1665_v20 = vadd.f32 -0.5, %v1021_v1  ;;  %v2336_v21 = vpop.f32.mrb[14].mxu0  ;;  %v902_v51 = vld [vmem:[%s2151_s13 + $0x80] sm:$0xff] }
 0x239   : > { %v1343_v22 = vsel %vm2326_vm9, %v1215_v13, %v1667_v14  ;;  %v960_v23 = vsub.f32 %v2288_v25, %v896_v61  ;;  %v962_v24 = vsub.f32 %v648_v41, %v898_v7  ;;  %v963_v26 = vsub.f32 %v650_v46, %v899_v8  ;;  %v2341_v27 = vpop.f32.mrb[15].mxu0  ;;  %v2343_v28 = vpop.f32.mrb[14].mxu1 }
 0x23a   : > { %v1400_v29 = vadd.f32 %v1343_v22, %v1342_v18  ;;  %v1341_v31 = vsel %vm1085_vm10, %v1213_v19, %v1665_v20  ;;  %v961_v32 = vsub.f32 %v2294_v30, %v897_v15  ;;  %v964_v33 = vsub.f32 %v809_v47, %v900_v16  ;;  %v2346_v34 = vpop.f32.mrb[15].mxu1  ;;  %v909_v16 = vld [vmem:[%s2151_s13 + $0xb8] sm:$0xff] }
 0x23b   : > { %v1431_v35 = vadd.f32 %v1415_v11, %v1341_v31  ;;  %v1024_v36 = vand.u32 2147483647, %v960_v23  ;;  %v1152_v37 = vmul.f32 0.5, %v960_v23  ;;  %v1026_v38 = vand.u32 2147483647, %v962_v24 }
 0x23c   : > { %v1154_v39 = vmul.f32 0.5, %v962_v24  ;;  %v1027_v25 = vand.u32 2147483647, %v963_v26  ;;  %v1155_v40 = vmul.f32 0.5, %v963_v26  ;;  %v1025_v41 = vand.u32 2147483647, %v961_v32 }
 0x23d   : > { %v1446_v42 = vadd.f32 %v1431_v35, %v1430_v57  ;;  %vm2348_vm11 = vcmp.lt.f32.partialorder %v1024_v36, 1.0  ;;  %v1216_v44 = vmul.f32 %v1152_v37, %v960_v23  ;;  %v1668_v30 = vadd.f32 -0.5, %v1024_v36  ;;  %v2352_v45 = vpop.f32.mrb[16].mxu0  ;;  %v2354_v46 = vpop.f32.mrb[16].mxu1  ;;  %v907_v35 = vld [vmem:[%s2151_s13 + $0xa8] sm:$0xff] }
 0x23e   : > { %vm2356_vm12 = vcmp.lt.f32.partialorder %v1026_v38, 1.0  ;;  %v1218_v48 = vmul.f32 %v1154_v39, %v962_v24  ;;  %v1670_v49 = vadd.f32 -0.5, %v1026_v38  ;;  %vm2360_vm13 = vcmp.lt.f32.partialorder %v1027_v25, 1.0  ;;  %v2365_v53 = vpop.f32.mrb[17].mxu0  ;;  %v2367_v54 = vpop.f32.mrb[17].mxu1 }
 0x23f   : > { %v1344_v55 = vsel %vm2348_vm11, %v1216_v44, %v1668_v30  ;;  %v1219_v56 = vmul.f32 %v1155_v40, %v963_v26  ;;  %v1671_v57 = vadd.f32 -0.5, %v1027_v25  ;;  %vm2371_vm14 = vcmp.lt.f32.partialorder %v1025_v41, 1.0 }
 0x240   : > { %v1416_v61 = vadd.f32 %v1400_v29, %v1344_v55  ;;  %v1346_v63 = vsel %vm2356_vm12, %v1218_v48, %v1670_v49  ;;  %v1153_v0 = vmul.f32 0.5, %v961_v32  ;;  %v1669_v1 = vadd.f32 -0.5, %v1025_v41  ;;  %v2379_v2 = vpop.f32.mrb[18].mxu0 }
 0x241   : > { %v1347_v3 = vsel %vm2360_vm13, %v1219_v56, %v1671_v57  ;;  %v1028_v4 = vand.u32 2147483647, %v964_v33  ;;  %v1156_v5 = vmul.f32 0.5, %v964_v33  ;;  %v966_v6 = vsub.f32 %v2312_v62, %v902_v51  ;;  %v2384_v7 = vpop.f32.mrb[19].mxu0  ;;  %v2386_v8 = vpop.f32.mrb[18].mxu1 }
 0x242   : > { %v1401_v11 = vadd.f32 %v1347_v3, %v1346_v63  ;;  %v1217_v12 = vmul.f32 %v1153_v0, %v961_v32  ;;  %v967_v13 = vsub.f32 %v2322_v9, %v903_v59  ;;  %v965_v14 = vsub.f32 %v2303_v52, %v901_v60  ;;  %v2390_v15 = vpop.f32.mrb[19].mxu1  ;;  %v904_v9 = vld [vmem:[%s2151_s13 + $0x90] sm:$0xff] }
 0x243   : > { %vm2392_vm15 = vcmp.lt.f32.partialorder %v1028_v4, 1.0  ;;  %v1220_v62 = vmul.f32 %v1156_v5, %v964_v33  ;;  %v1672_v18 = vadd.f32 -0.5, %v1028_v4  ;;  %v1030_v19 = vand.u32 2147483647, %v966_v6  ;;  %v906_v33 = vld [vmem:[%s2151_s13 + $0xa0] sm:$0xff]  ;;  %v905_v4 = vld [vmem:[%s2151_s13 + $0x98] sm:$0xff] }
 0x244   : > { %v1345_v20 = vsel %vm2371_vm14, %v1217_v12, %v1669_v1  ;;  %v1158_v22 = vmul.f32 0.5, %v966_v6  ;;  %v1031_v23 = vand.u32 2147483647, %v967_v13  ;;  %v1159_v24 = vmul.f32 0.5, %v967_v13  ;;  %v2399_v26 = vpop.f32.mrb[20].mxu0 }
 0x245   : > { %v1432_v52 = vadd.f32 %v1416_v61, %v1345_v20  ;;  %v1348_v29 = vsel %vm2392_vm15, %v1220_v62, %v1672_v18  ;;  %vm2403_vm0 = vcmp.lt.f32.partialorder %v1030_v19, 1.0  ;;  %v1674_v32 = vadd.f32 -0.5, %v1030_v19  ;;  %v2409_v36 = vpop.f32.mrb[21].mxu0  ;;  %v2411_v37 = vpop.f32.mrb[20].mxu1 }
 0x246   : > { %v1417_v38 = vadd.f32 %v1401_v11, %v1348_v29  ;;  %v1222_v39 = vmul.f32 %v1158_v22, %v966_v6  ;;  %vm2413_vm1 = vcmp.lt.f32.partialorder %v1031_v23, 1.0  ;;  %v1223_v40 = vmul.f32 %v1159_v24, %v967_v13  ;;  %v2417_v41 = vpop.f32.mrb[21].mxu1  ;;  %v908_v13 = vld [vmem:[%s2151_s13 + $0xb0] sm:$0xff]  ;;  %v914_v22 = vld [vmem:[%s2151_s13 + $0xe0] sm:$0xff] }
 0x247   : > { %v1447_v43 = vadd.f32 %v1446_v42, %v1432_v52  ;;  %v1675_v44 = vadd.f32 -0.5, %v1031_v23  ;;  %v1029_v30 = vand.u32 2147483647, %v965_v14  ;;  %v1157_v47 = vmul.f32 0.5, %v965_v14  ;;  %v911_v23 = vld [vmem:[%s2151_s13 + $0xc8] sm:$0xff] }
 0x248   : > { %v1350_v48 = vsel %vm2403_vm0, %v1222_v39, %v1674_v32  ;;  %v968_v49 = vsub.f32 %v2324_v10, %v904_v9  ;;  %v970_v50 = vsub.f32 %v2336_v21, %v906_v33  ;;  %v971_v51 = vsub.f32 %v2341_v27, %v907_v35  ;;  %v2424_v55 = vpop.f32.mrb[22].mxu0 }
 0x249   : > { %v1351_v56 = vsel %vm2413_vm1, %v1223_v40, %v1675_v44  ;;  %vm1093_vm2 = vcmp.lt.f32.partialorder %v1029_v30, 1.0  ;;  %v1221_v42 = vmul.f32 %v1157_v47, %v965_v14  ;;  %v1673_v57 = vadd.f32 -0.5, %v1029_v30  ;;  %v2428_v58 = vpop.f32.mrb[23].mxu0  ;;  %v2430_v59 = vpop.f32.mrb[22].mxu1  ;;  %v910_v14 = vld [vmem:[%s2151_s13 + $0xc0] sm:$0xff] }
 0x24a   : > { %v1402_v10 = vadd.f32 %v1351_v56, %v1350_v48  ;;  %v1032_v21 = vand.u32 2147483647, %v968_v49  ;;  %v1160_v60 = vmul.f32 0.5, %v968_v49  ;;  %v1034_v27 = vand.u32 2147483647, %v970_v50  ;;  %v2432_v61 = vpop.f32.mrb[23].mxu1 }
 0x24b   : > { %v1349_v63 = vsel %vm1093_vm2, %v1221_v42, %v1673_v57  ;;  %v1162_v0 = vmul.f32 0.5, %v970_v50  ;;  %v1035_v1 = vand.u32 2147483647, %v971_v51  ;;  %v1163_v3 = vmul.f32 0.5, %v971_v51 }
 0x24c   : > { %v1433_v5 = vadd.f32 %v1417_v38, %v1349_v63  ;;  %vm2435_vm3 = vcmp.lt.f32.partialorder %v1032_v21, 1.0  ;;  %v1224_v11 = vmul.f32 %v1160_v60, %v968_v49  ;;  %v1676_v12 = vadd.f32 -0.5, %v1032_v21  ;;  %v2442_v62 = vpop.f32.mrb[24].mxu0 }
 0x24d   : > { %vm2444_vm4 = vcmp.lt.f32.partialorder %v1034_v27, 1.0  ;;  %v1226_v19 = vmul.f32 %v1162_v0, %v970_v50  ;;  %v1678_v20 = vadd.f32 -0.5, %v1034_v27  ;;  %vm2448_vm5 = vcmp.lt.f32.partialorder %v1035_v1, 1.0  ;;  %v2453_v24 = vpop.f32.mrb[25].mxu0  ;;  %v2455_v9 = vpop.f32.mrb[24].mxu1 }
 0x24e   : > { %v1448_v52 = vadd.f32 %v1447_v43, %v1433_v5  ;;  %v1352_v29 = vsel %vm2435_vm3, %v1224_v11, %v1676_v12  ;;  %v1227_v31 = vmul.f32 %v1163_v3, %v971_v51  ;;  %v1679_v32 = vadd.f32 -0.5, %v1035_v1  ;;  %v2459_v33 = vpop.f32.mrb[25].mxu1  ;;  %v912_v12 = vld [vmem:[%s2151_s13 + $0xd0] sm:$0xff] }
 0x24f   : > { %v1418_v35 = vadd.f32 %v1402_v10, %v1352_v29  ;;  %v1354_v38 = vsel %vm2444_vm4, %v1226_v19, %v1678_v20  ;;  %v969_v39 = vsub.f32 %v2332_v17, %v905_v4  ;;  %v972_v25 = vsub.f32 %v2343_v28, %v908_v13 }
 0x250   : > { %v1355_v40 = vsel %vm2448_vm5, %v1227_v31, %v1679_v32  ;;  %v974_v43 = vsub.f32 %v2352_v45, %v910_v14  ;;  %v975_v44 = vsub.f32 %v2365_v53, %v911_v23  ;;  %v973_v30 = vsub.f32 %v2346_v34, %v909_v16  ;;  %v2470_v47 = vpop.f32.mrb[26].mxu0  ;;  %v915_v23 = vld [vmem:[%s2151_s13 + $0xe8] sm:$0xff] }
 0x251   : > { %v1403_v48 = vadd.f32 %v1355_v40, %v1354_v38  ;;  %v1033_v49 = vand.u32 2147483647, %v969_v39  ;;  %v1161_v50 = vmul.f32 0.5, %v969_v39  ;;  %v1036_v51 = vand.u32 2147483647, %v972_v25  ;;  %v2472_v56 = vpop.f32.mrb[27].mxu0 }
 0x252   : > { %v1164_v17 = vmul.f32 0.5, %v972_v25  ;;  %v1038_v42 = vand.u32 2147483647, %v974_v43  ;;  %v1166_v28 = vmul.f32 0.5, %v974_v43  ;;  %v1039_v57 = vand.u32 2147483647, %v975_v44 }
 0x253   : > { %vm2474_vm6 = vcmp.lt.f32.partialorder %v1033_v49, 1.0  ;;  %v1225_v45 = vmul.f32 %v1161_v50, %v969_v39  ;;  %v1677_v53 = vadd.f32 -0.5, %v1033_v49  ;;  %vm2478_vm7 = vcmp.lt.f32.partialorder %v1036_v51, 1.0  ;;  %v2482_v21 = vpop.f32.mrb[26].mxu1 }
 0x254   : > { %v1228_v60 = vmul.f32 %v1164_v17, %v972_v25  ;;  %v1680_v27 = vadd.f32 -0.5, %v1036_v51  ;;  %vm2484_vm8 = vcmp.lt.f32.partialorder %v1038_v42, 1.0  ;;  %v1230_v0 = vmul.f32 %v1166_v28, %v974_v43  ;;  %v2488_v1 = vpop.f32.mrb[28].mxu0  ;;  %v2490_v3 = vpop.f32.mrb[27].mxu1  ;;  %v913_v25 = vld [vmem:[%s2151_s13 + $0xd8] sm:$0xff] }
 0x255   : > { %v1353_v4 = vsel %vm2474_vm6, %v1225_v45, %v1677_v53  ;;  %v1682_v5 = vadd.f32 -0.5, %v1038_v42  ;;  %vm2494_vm9 = vcmp.lt.f32.partialorder %v1039_v57, 1.0  ;;  %v1167_v11 = vmul.f32 0.5, %v975_v44  ;;  %v2499_v13 = vpop.f32.mrb[29].mxu0  ;;  %v2501_v14 = vpop.f32.mrb[28].mxu1 }
 0x256   : > { %v1434_v16 = vadd.f32 %v1418_v35, %v1353_v4  ;;  %v1356_v18 = vsel %vm2478_vm7, %v1228_v60, %v1680_v27  ;;  %v1683_v19 = vadd.f32 -0.5, %v1039_v57  ;;  %v1037_v20 = vand.u32 2147483647, %v973_v30  ;;  %v2507_v29 = vpop.f32.mrb[29].mxu1  ;;  %v918_v4 = vld [vmem:[%s2151_s13 + $0x100] sm:$0xff] }
 0x257   : > { %v1419_v31 = vadd.f32 %v1403_v48, %v1356_v18  ;;  %v1358_v32 = vsel %vm2484_vm8, %v1230_v0, %v1682_v5  ;;  %v1231_v38 = vmul.f32 %v1167_v11, %v975_v44  ;;  %v1165_v39 = vmul.f32 0.5, %v973_v30  ;;  %v916_v0 = vld [vmem:[%s2151_s13 + $0xf0] sm:$0xff] }
 0x258   : > { %v1449_v40 = vadd.f32 %v1448_v52, %v1434_v16  ;;  %vm2512_vm10 = vcmp.lt.f32.partialorder %v1037_v20, 1.0  ;;  %v1681_v35 = vadd.f32 -0.5, %v1037_v20  ;;  %v976_v49 = vsub.f32 %v2354_v46, %v912_v12  ;;  %v2517_v50 = vpop.f32.mrb[30].mxu0  ;;  %v919_v16 = vld [vmem:[%s2151_s13 + $0x108] sm:$0xff]  ;;  %v922_v12 = vld [vmem:[%s2151_s13 + $0x120] sm:$0xff] }
 0x259   : > { %v1359_v51 = vsel %vm2494_vm9, %v1231_v38, %v1683_v19  ;;  %v1229_v48 = vmul.f32 %v1165_v39, %v973_v30  ;;  %v978_v17 = vsub.f32 %v2379_v2, %v914_v22  ;;  %v979_v44 = vsub.f32 %v2384_v7, %v915_v23  ;;  %v2523_v42 = vpop.f32.mrb[31].mxu0  ;;  %v2525_v52 = vpop.f32.mrb[30].mxu1 }
 0x25a   : > { %v1404_v28 = vadd.f32 %v1359_v51, %v1358_v32  ;;  %v1040_v57 = vand.u32 2147483647, %v976_v49  ;;  %v1168_v10 = vmul.f32 0.5, %v976_v49  ;;  %v977_v46 = vsub.f32 %v2367_v54, %v913_v25  ;;  %v2528_v45 = vpop.f32.mrb[31].mxu1  ;;  %v917_v32 = vld [vmem:[%s2151_s13 + $0xf8] sm:$0xff] }
 0x25b   : > { %v1357_v30 = vsel %vm2512_vm10, %v1229_v48, %v1681_v35  ;;  %v1042_v2 = vand.u32 2147483647, %v978_v17  ;;  %v1170_v53 = vmul.f32 0.5, %v978_v17  ;;  %v1043_v7 = vand.u32 2147483647, %v979_v44 }
 0x25c   : > { %v1435_v34 = vadd.f32 %v1419_v31, %v1357_v30  ;;  %vm2532_vm11 = vcmp.lt.f32.partialorder %v1040_v57, 1.0  ;;  %v1232_v27 = vmul.f32 %v1168_v10, %v976_v49  ;;  %v1684_v63 = vadd.f32 -0.5, %v1040_v57  ;;  %v2538_v54 = vpop.f32.mrb[32].mxu0 }
 0x25d   : > { %vm2540_vm12 = vcmp.lt.f32.partialorder %v1042_v2, 1.0  ;;  %v1234_v6 = vmul.f32 %v1170_v53, %v978_v17  ;;  %v1686_v11 = vadd.f32 -0.5, %v1042_v2  ;;  %vm2544_vm13 = vcmp.lt.f32.partialorder %v1043_v7, 1.0  ;;  %v2549_v18 = vpop.f32.mrb[33].mxu0  ;;  %v2551_v19 = vpop.f32.mrb[32].mxu1 }
 0x25e   : > { %v1450_v20 = vadd.f32 %v1449_v40, %v1435_v34  ;;  %v1360_v22 = vsel %vm2532_vm11, %v1232_v27, %v1684_v63  ;;  %v1171_v23 = vmul.f32 0.5, %v979_v44  ;;  %v1687_v31 = vadd.f32 -0.5, %v1043_v7  ;;  %v2556_v38 = vpop.f32.mrb[33].mxu1 }
 0x25f   : > { %v1420_v39 = vadd.f32 %v1404_v28, %v1360_v22  ;;  %v1362_v25 = vsel %vm2540_vm12, %v1234_v6, %v1686_v11  ;;  %v1041_v43 = vand.u32 2147483647, %v977_v46  ;;  %v1169_v35 = vmul.f32 0.5, %v977_v46  ;;  %v920_v11 = vld [vmem:[%s2151_s13 + $0x110] sm:$0xff] }
 0x260   : > { %v1235_v49 = vmul.f32 %v1171_v23, %v979_v44  ;;  %v980_v51 = vsub.f32 %v2386_v8, %v916_v0  ;;  %v982_v48 = vsub.f32 %v2399_v26, %v918_v4  ;;  %v983_v40 = vsub.f32 %v2409_v36, %v919_v16  ;;  %v2563_v17 = vpop.f32.mrb[34].mxu0  ;;  %v923_v16 = vld [vmem:[%s2151_s13 + $0x128] sm:$0xff]  ;;  %v924_v0 = vld [vmem:[%s2151_s13 + $0x130] sm:$0xff] }
 0x261   : > { %vm1105_vm14 = vcmp.lt.f32.partialorder %v1041_v43, 1.0  ;;  %v1233_v57 = vmul.f32 %v1169_v35, %v977_v46  ;;  %v1685_v10 = vadd.f32 -0.5, %v1041_v43  ;;  %v981_v30 = vsub.f32 %v2390_v15, %v917_v32  ;;  %v2566_v28 = vpop.f32.mrb[35].mxu0  ;;  %v2568_v2 = vpop.f32.mrb[34].mxu1 }
 0x262   : > { %v1363_v44 = vsel %vm2544_vm13, %v1235_v49, %v1687_v31  ;;  %v1044_v53 = vand.u32 2147483647, %v980_v51  ;;  %v1172_v8 = vmul.f32 0.5, %v980_v51  ;;  %v1046_v26 = vand.u32 2147483647, %v982_v48  ;;  %v2572_v36 = vpop.f32.mrb[35].mxu1 }
 0x263   : > { %v1405_v7 = vadd.f32 %v1363_v44, %v1362_v25  ;;  %v1361_v46 = vsel %vm1105_vm14, %v1233_v57, %v1685_v10  ;;  %v1174_v34 = vmul.f32 0.5, %v982_v48  ;;  %v1047_v60 = vand.u32 2147483647, %v983_v40 }
 0x264   : > { %v1436_v15 = vadd.f32 %v1420_v39, %v1361_v46  ;;  %vm1108_vm15 = vcmp.lt.f32.partialorder %v1044_v53, 1.0  ;;  %v1236_v27 = vmul.f32 %v1172_v8, %v980_v51  ;;  %v1688_v63 = vadd.f32 -0.5, %v1044_v53  ;;  %v921_v39 = vld [vmem:[%s2151_s13 + $0x118] sm:$0xff] }
 0x265   : > { %vm2574_vm0 = vcmp.lt.f32.partialorder %v1046_v26, 1.0  ;;  %v1238_v4 = vmul.f32 %v1174_v34, %v982_v48  ;;  %v1690_v5 = vadd.f32 -0.5, %v1046_v26  ;;  %vm2578_vm1 = vcmp.lt.f32.partialorder %v1047_v60, 1.0 }
 0x266   : > { %v1451_v22 = vadd.f32 %v1450_v20, %v1436_v15  ;;  %v1364_v23 = vsel %vm1108_vm15, %v1236_v27, %v1688_v63  ;;  %v1175_v31 = vmul.f32 0.5, %v983_v40  ;;  %v1691_v32 = vadd.f32 -0.5, %v1047_v60  ;;  %v929_v63 = vld [vmem:[%s2151_s13 + $0x158] sm:$0xff] }
 0x267   : > { %v1421_v25 = vadd.f32 %v1405_v7, %v1364_v23  ;;  %v1366_v43 = vsel %vm2574_vm0, %v1238_v4, %v1690_v5  ;;  %v1045_v35 = vand.u32 2147483647, %v981_v30  ;;  %v1173_v49 = vmul.f32 0.5, %v981_v30  ;;  %v926_v4 = vld [vmem:[%s2151_s13 + $0x140] sm:$0xff]  ;;  %v927_v5 = vld [vmem:[%s2151_s13 + $0x148] sm:$0xff]  ;;  %v925_v23 = vld [vmem:[%s2151_s13 + $0x138] sm:$0xff] }
 0x268   : > { %v1239_v51 = vmul.f32 %v1175_v31, %v983_v40  ;;  %v984_v48 = vsub.f32 %v2411_v37, %v920_v11  ;;  %v986_v57 = vsub.f32 %v2424_v55, %v922_v12  ;;  %v987_v10 = vsub.f32 %v2428_v58, %v923_v16 }
 0x269   : > { %vm1109_vm2 = vcmp.lt.f32.partialorder %v1045_v35, 1.0  ;;  %v1237_v44 = vmul.f32 %v1173_v49, %v981_v30  ;;  %v1689_v20 = vadd.f32 -0.5, %v1045_v35  ;;  %v985_v53 = vsub.f32 %v2417_v41, %v921_v39 }
 0x26a   : > { %v1367_v8 = vsel %vm2578_vm1, %v1239_v51, %v1691_v32  ;;  %v1048_v26 = vand.u32 2147483647, %v984_v48  ;;  %v1176_v7 = vmul.f32 0.5, %v984_v48  ;;  %v1050_v40 = vand.u32 2147483647, %v986_v57 }
 0x26b   : > { %v1406_v46 = vadd.f32 %v1367_v8, %v1366_v43  ;;  %v1365_v37 = vsel %vm1109_vm2, %v1237_v44, %v1689_v20  ;;  %v1178_v34 = vmul.f32 0.5, %v986_v57  ;;  %v1051_v55 = vand.u32 2147483647, %v987_v10 }
 0x26c   : > { %v1437_v58 = vadd.f32 %v1421_v25, %v1365_v37  ;;  %vm1112_vm3 = vcmp.lt.f32.partialorder %v1048_v26, 1.0  ;;  %v1240_v30 = vmul.f32 %v1176_v7, %v984_v48  ;;  %v1692_v60 = vadd.f32 -0.5, %v1048_v26 }
 0x26d   : > { %vm2594_vm4 = vcmp.lt.f32.partialorder %v1050_v40, 1.0  ;;  %v1242_v15 = vmul.f32 %v1178_v34, %v986_v57  ;;  %v1694_v27 = vadd.f32 -0.5, %v1050_v40  ;;  %vm2598_vm5 = vcmp.lt.f32.partialorder %v1051_v55, 1.0 }
 0x26e   : > { %v1452_v6 = vadd.f32 %v1451_v22, %v1437_v58  ;;  %v1368_v11 = vsel %vm1112_vm3, %v1240_v30, %v1692_v60  ;;  %v1179_v12 = vmul.f32 0.5, %v987_v10  ;;  %v1695_v16 = vadd.f32 -0.5, %v1051_v55  ;;  %v928_v55 = vld [vmem:[%s2151_s13 + $0x150] sm:$0xff]  ;;  %v930_v58 = vld [vmem:[%s2151_s13 + $0x160] sm:$0xff]  ;;  %v931_v30 = vld [vmem:[%s2151_s13 + $0x168] sm:$0xff] }
 0x26f   : > { %v1422_v31 = vadd.f32 %v1406_v46, %v1368_v11  ;;  %v1370_v32 = vsel %vm2594_vm4, %v1242_v15, %v1694_v27  ;;  %v1049_v39 = vand.u32 2147483647, %v985_v53  ;;  %v1177_v25 = vmul.f32 0.5, %v985_v53 }
 0x270   : > { %v1243_v43 = vmul.f32 %v1179_v12, %v987_v10  ;;  %v988_v35 = vsub.f32 %v2430_v59, %v924_v0  ;;  %v990_v49 = vsub.f32 %v2442_v62, %v926_v4  ;;  %v991_v51 = vsub.f32 %v2453_v24, %v927_v5 }
 0x271   : > { %vm1113_vm6 = vcmp.lt.f32.partialorder %v1049_v39, 1.0  ;;  %v1241_v48 = vmul.f32 %v1177_v25, %v985_v53  ;;  %v1693_v22 = vadd.f32 -0.5, %v1049_v39  ;;  %v989_v57 = vsub.f32 %v2432_v61, %v925_v23 }
 0x272   : > { %v1371_v44 = vsel %vm2598_vm5, %v1243_v43, %v1695_v16  ;;  %v1052_v20 = vand.u32 2147483647, %v988_v35  ;;  %v1180_v8 = vmul.f32 0.5, %v988_v35  ;;  %v1054_v10 = vand.u32 2147483647, %v990_v49 }
 0x273   : > { %v1407_v26 = vadd.f32 %v1371_v44, %v1370_v32  ;;  %v1369_v59 = vsel %vm1113_vm6, %v1241_v48, %v1693_v22  ;;  %v1182_v7 = vmul.f32 0.5, %v990_v49  ;;  %v1055_v62 = vand.u32 2147483647, %v991_v51 }
 0x274   : > { %v1438_v24 = vadd.f32 %v1422_v31, %v1369_v59  ;;  %vm1116_vm7 = vcmp.lt.f32.partialorder %v1052_v20, 1.0  ;;  %v1244_v53 = vmul.f32 %v1180_v8, %v988_v35  ;;  %v1696_v40 = vadd.f32 -0.5, %v1052_v20  ;;  %v935_v59 = vld [vmem:[%s2151_s13 + $0x188] sm:$0xff] }
 0x275   : > { %vm2614_vm8 = vcmp.lt.f32.partialorder %v1054_v10, 1.0  ;;  %v1246_v46 = vmul.f32 %v1182_v7, %v990_v49  ;;  %v1698_v37 = vadd.f32 -0.5, %v1054_v10  ;;  %vm2618_vm9 = vcmp.lt.f32.partialorder %v1055_v62, 1.0  ;;  %v932_v10 = vld [vmem:[%s2151_s13 + $0x170] sm:$0xff] }
 0x276   : > { %v1453_v60 = vadd.f32 %v1452_v6, %v1438_v24  ;;  %v1372_v41 = vsel %vm1116_vm7, %v1244_v53, %v1696_v40  ;;  %v1183_v15 = vmul.f32 0.5, %v991_v51  ;;  %v1699_v27 = vadd.f32 -0.5, %v1055_v62  ;;  %v933_v40 = vld [vmem:[%s2151_s13 + $0x178] sm:$0xff] }
 0x277   : > { %v1423_v0 = vadd.f32 %v1407_v26, %v1372_v41  ;;  %v1374_v4 = vsel %vm2614_vm8, %v1246_v46, %v1698_v37  ;;  %v1053_v5 = vand.u32 2147483647, %v989_v57  ;;  %v1181_v11 = vmul.f32 0.5, %v989_v57  ;;  %v934_v26 = vld [vmem:[%s2151_s13 + $0x180] sm:$0xff] }
 0x278   : > { %v1247_v12 = vmul.f32 %v1183_v15, %v991_v51  ;;  %v992_v16 = vsub.f32 %v2455_v9, %v928_v55  ;;  %v994_v23 = vsub.f32 %v2470_v47, %v930_v58  ;;  %v995_v31 = vsub.f32 %v2472_v56, %v931_v30 }
 0x279   : > { %vm1117_vm10 = vcmp.lt.f32.partialorder %v1053_v5, 1.0  ;;  %v1245_v32 = vmul.f32 %v1181_v11, %v989_v57  ;;  %v1697_v6 = vadd.f32 -0.5, %v1053_v5  ;;  %v993_v39 = vsub.f32 %v2459_v33, %v929_v63 }
 0x27a   : > { %v1375_v25 = vsel %vm2618_vm9, %v1247_v12, %v1699_v27  ;;  %v1056_v43 = vand.u32 2147483647, %v992_v16  ;;  %v1184_v35 = vmul.f32 0.5, %v992_v16  ;;  %v1058_v49 = vand.u32 2147483647, %v994_v23 }
 0x27b   : > { %v1408_v51 = vadd.f32 %v1375_v25, %v1374_v4  ;;  %v1373_v9 = vsel %vm1117_vm10, %v1245_v32, %v1697_v6  ;;  %v1186_v48 = vmul.f32 0.5, %v994_v23  ;;  %v1059_v47 = vand.u32 2147483647, %v995_v31  ;;  %v938_v25 = vld [vmem:[%s2151_s13 + $0x1a0] sm:$0xff] }
 0x27c   : > { %v1439_v56 = vadd.f32 %v1423_v0, %v1373_v9  ;;  %vm1120_vm11 = vcmp.lt.f32.partialorder %v1056_v43, 1.0  ;;  %v1248_v22 = vmul.f32 %v1184_v35, %v992_v16  ;;  %v1700_v57 = vadd.f32 -0.5, %v1056_v43  ;;  %v939_v43 = vld [vmem:[%s2151_s13 + $0x1a8] sm:$0xff] }
 0x27d   : > { %vm2634_vm12 = vcmp.lt.f32.partialorder %v1058_v49, 1.0  ;;  %v1250_v44 = vmul.f32 %v1186_v48, %v994_v23  ;;  %v1702_v20 = vadd.f32 -0.5, %v1058_v49  ;;  %vm2638_vm13 = vcmp.lt.f32.partialorder %v1059_v47, 1.0  ;;  %v937_v48 = vld [vmem:[%s2151_s13 + $0x198] sm:$0xff] }
 0x27e   : > { %v1454_v7 = vadd.f32 %v1453_v60, %v1439_v56  ;;  %v1376_v62 = vsel %vm1120_vm11, %v1248_v22, %v1700_v57  ;;  %v1187_v24 = vmul.f32 0.5, %v995_v31  ;;  %v1703_v53 = vadd.f32 -0.5, %v1059_v47 }
 0x27f   : > { %v1424_v61 = vadd.f32 %v1408_v51, %v1376_v62  ;;  %v1378_v46 = vsel %vm2634_vm12, %v1250_v44, %v1702_v20  ;;  %v1057_v37 = vand.u32 2147483647, %v993_v39  ;;  %v1185_v34 = vmul.f32 0.5, %v993_v39 }
 0x280   : > { %v1251_v55 = vmul.f32 %v1187_v24, %v995_v31  ;;  %v996_v58 = vsub.f32 %v2482_v21, %v932_v10  ;;  %v998_v30 = vsub.f32 %v2488_v1, %v934_v26  ;;  %v999_v41 = vsub.f32 %v2499_v13, %v935_v59 }
 0x281   : > { %vm1121_vm14 = vcmp.lt.f32.partialorder %v1057_v37, 1.0  ;;  %v1249_v15 = vmul.f32 %v1185_v34, %v993_v39  ;;  %v1701_v60 = vadd.f32 -0.5, %v1057_v37  ;;  %v997_v27 = vsub.f32 %v2490_v3, %v933_v40  ;;  %v936_v39 = vld [vmem:[%s2151_s13 + $0x190] sm:$0xff] }
 0x282   : > { %v1379_v63 = vsel %vm2638_vm13, %v1251_v55, %v1703_v53  ;;  %v1060_v0 = vand.u32 2147483647, %v996_v58  ;;  %v1188_v4 = vmul.f32 0.5, %v996_v58  ;;  %v1062_v5 = vand.u32 2147483647, %v998_v30 }
 0x283   : > { %v1409_v11 = vadd.f32 %v1379_v63, %v1378_v46  ;;  %v1377_v21 = vsel %vm1121_vm14, %v1249_v15, %v1701_v60  ;;  %v1190_v12 = vmul.f32 0.5, %v998_v30  ;;  %v1063_v1 = vand.u32 2147483647, %v999_v41  ;;  %v943_v15 = vld [vmem:[%s2151_s13 + $0x1c8] sm:$0xff] }
 0x284   : > { %v1440_v13 = vadd.f32 %v1424_v61, %v1377_v21  ;;  %vm1124_vm15 = vcmp.lt.f32.partialorder %v1060_v0, 1.0  ;;  %v1252_v16 = vmul.f32 %v1188_v4, %v996_v58  ;;  %v1704_v23 = vadd.f32 -0.5, %v1060_v0  ;;  %v941_v4 = vld [vmem:[%s2151_s13 + $0x1b8] sm:$0xff] }
 0x285   : > { %vm2654_vm0 = vcmp.lt.f32.partialorder %v1062_v5, 1.0  ;;  %v1254_v31 = vmul.f32 %v1190_v12, %v998_v30  ;;  %v1706_v32 = vadd.f32 -0.5, %v1062_v5  ;;  %vm2658_vm1 = vcmp.lt.f32.partialorder %v1063_v1, 1.0  ;;  %v940_v30 = vld [vmem:[%s2151_s13 + $0x1b0] sm:$0xff] }
 0x286   : > { %v1455_v35 = vadd.f32 %v1454_v7, %v1440_v13  ;;  %v1380_v49 = vsel %vm1124_vm15, %v1252_v16, %v1704_v23  ;;  %v1191_v51 = vmul.f32 0.5, %v999_v41  ;;  %v1707_v9 = vadd.f32 -0.5, %v1063_v1 }
 0x287   : > { %v1425_v47 = vadd.f32 %v1409_v11, %v1380_v49  ;;  %v1382_v56 = vsel %vm2654_vm0, %v1254_v31, %v1706_v32  ;;  %v1061_v22 = vand.u32 2147483647, %v997_v27  ;;  %v1189_v57 = vmul.f32 0.5, %v997_v27 }
 0x288   : > { %v1255_v33 = vmul.f32 %v1191_v51, %v999_v41  ;;  %v1000_v44 = vsub.f32 %v2501_v14, %v936_v39  ;;  %v1002_v20 = vsub.f32 %v2517_v50, %v938_v25  ;;  %v1003_v8 = vsub.f32 %v2523_v42, %v939_v43  ;;  %v942_v41 = vld [vmem:[%s2151_s13 + $0x1c0] sm:$0xff] }
 0x289   : > { %vm1125_vm2 = vcmp.lt.f32.partialorder %v1061_v22, 1.0  ;;  %v1253_v10 = vmul.f32 %v1189_v57, %v997_v27  ;;  %v1705_v26 = vadd.f32 -0.5, %v1061_v22  ;;  %v1001_v59 = vsub.f32 %v2507_v29, %v937_v48  ;;  %v944_v22 = vld [vmem:[%s2151_s13 + $0x1d0] sm:$0xff]  ;;  %v946_v57 = vld [vmem:[%s2151_s13 + $0x1e0] sm:$0xff] }
 0x28a   : > { %v1383_v7 = vsel %vm2658_vm1, %v1255_v33, %v1707_v9  ;;  %v1064_v62 = vand.u32 2147483647, %v1000_v44  ;;  %v1192_v24 = vmul.f32 0.5, %v1000_v44  ;;  %v1066_v53 = vand.u32 2147483647, %v1002_v20  ;;  %v947_v33 = vld [vmem:[%s2151_s13 + $0x1e8] sm:$0xff] }
 0x28b   : > { %v1410_v40 = vadd.f32 %v1383_v7, %v1382_v56  ;;  %v1381_v14 = vsel %vm1125_vm2, %v1253_v10, %v1705_v26  ;;  %v1194_v61 = vmul.f32 0.5, %v1002_v20  ;;  %v1067_v50 = vand.u32 2147483647, %v1003_v8  ;;  %v945_v26 = vld [vmem:[%s2151_s13 + $0x1d8] sm:$0xff] }
 0x28c   : > { %v1441_v42 = vadd.f32 %v1425_v47, %v1381_v14  ;;  %vm1128_vm3 = vcmp.lt.f32.partialorder %v1064_v62, 1.0  ;;  %v1256_v46 = vmul.f32 %v1192_v24, %v1000_v44  ;;  %v1708_v37 = vadd.f32 -0.5, %v1064_v62 }
 0x28d   : > { %vm2674_vm4 = vcmp.lt.f32.partialorder %v1066_v53, 1.0  ;;  %v1258_v34 = vmul.f32 %v1194_v61, %v1002_v20  ;;  %v1710_v55 = vadd.f32 -0.5, %v1066_v53  ;;  %vm2678_vm5 = vcmp.lt.f32.partialorder %v1067_v50, 1.0 }
 0x28e   : > { %v1456_v60 = vadd.f32 %v1455_v35, %v1441_v42  ;;  %v1384_v27 = vsel %vm1128_vm3, %v1256_v46, %v1708_v37  ;;  %v1195_v63 = vmul.f32 0.5, %v1003_v8  ;;  %v1711_v0 = vadd.f32 -0.5, %v1067_v50 }
 0x28f   : > { %v1426_v5 = vadd.f32 %v1410_v40, %v1384_v27  ;;  %v1386_v11 = vsel %vm2674_vm4, %v1258_v34, %v1710_v55  ;;  %v1065_v21 = vand.u32 2147483647, %v1001_v59  ;;  %v1193_v12 = vmul.f32 0.5, %v1001_v59 }
 0x290   : > { %v1259_v1 = vmul.f32 %v1195_v63, %v1003_v8  ;;  %v1004_v13 = vsub.f32 %v2525_v52, %v940_v30  ;;  %v1006_v16 = vsub.f32 %v2538_v54, %v942_v41  ;;  %v1007_v23 = vsub.f32 %v2549_v18, %v943_v15  ;;  %v948_v63 = vld [vmem:[%s2151_s13 + $0x1f0] sm:$0xff] }
 0x291   : > { %vm1129_vm6 = vcmp.lt.f32.partialorder %v1065_v21, 1.0  ;;  %v1257_v3 = vmul.f32 %v1193_v12, %v1001_v59  ;;  %v1709_v31 = vadd.f32 -0.5, %v1065_v21  ;;  %v1005_v32 = vsub.f32 %v2528_v45, %v941_v4 }
 0x292   : > { %v1387_v6 = vsel %vm2678_vm5, %v1259_v1, %v1711_v0  ;;  %v1068_v39 = vand.u32 2147483647, %v1004_v13  ;;  %v1196_v25 = vmul.f32 0.5, %v1004_v13  ;;  %v1070_v43 = vand.u32 2147483647, %v1006_v16  ;;  %v949_v0 = vld [vmem:[%s2151_s13 + $0x1f8] sm:$0xff] }
 0x293   : > { %v1411_v35 = vadd.f32 %v1387_v6, %v1386_v11  ;;  %v1385_v52 = vsel %vm1129_vm6, %v1257_v3, %v1709_v31  ;;  %v1198_v49 = vmul.f32 0.5, %v1006_v16  ;;  %v1071_v54 = vand.u32 2147483647, %v1007_v23 }
 0x294   : > { %v1442_v18 = vadd.f32 %v1426_v5, %v1385_v52  ;;  %vm1132_vm7 = vcmp.lt.f32.partialorder %v1068_v39, 1.0  ;;  %v1260_v51 = vmul.f32 %v1196_v25, %v1004_v13  ;;  %v1712_v9 = vadd.f32 -0.5, %v1068_v39 }
 0x295   : > { %vm2694_vm8 = vcmp.lt.f32.partialorder %v1070_v43, 1.0  ;;  %v1262_v48 = vmul.f32 %v1198_v49, %v1006_v16  ;;  %v1714_v47 = vadd.f32 -0.5, %v1070_v43  ;;  %vm2698_vm9 = vcmp.lt.f32.partialorder %v1071_v54, 1.0 }
 0x296   : > { %v1457_v44 = vadd.f32 %v1456_v60, %v1442_v18  ;;  %v1388_v20 = vsel %vm1132_vm7, %v1260_v51, %v1712_v9  ;;  %v1199_v8 = vmul.f32 0.5, %v1007_v23  ;;  %v1715_v10 = vadd.f32 -0.5, %v1071_v54 }
 0x297   : > { %v1427_v59 = vadd.f32 %v1411_v35, %v1388_v20  ;;  %v1390_v7 = vsel %vm2694_vm8, %v1262_v48, %v1714_v47  ;;  %v1069_v62 = vand.u32 2147483647, %v1005_v32  ;;  %v1197_v24 = vmul.f32 0.5, %v1005_v32 }
 0x298   : > { %v1263_v53 = vmul.f32 %v1199_v8, %v1007_v23  ;;  %v1008_v40 = vsub.f32 %v2551_v19, %v944_v22  ;;  %v1010_v14 = vsub.f32 %v2563_v17, %v946_v57  ;;  %v1011_v61 = vsub.f32 %v2566_v28, %v947_v33  ;;  %v1461_v57 = vld [vmem:[%s2173_s11] sm:$0xff] }
 0x299   : > { %vm1133_vm10 = vcmp.lt.f32.partialorder %v1069_v62, 1.0  ;;  %v1261_v50 = vmul.f32 %v1197_v24, %v1005_v32  ;;  %v1713_v42 = vadd.f32 -0.5, %v1069_v62  ;;  %v1009_v46 = vsub.f32 %v2556_v38, %v945_v26 }
 0x29a   : > { %v1391_v37 = vsel %vm2698_vm9, %v1263_v53, %v1715_v10  ;;  %v1072_v29 = vand.u32 2147483647, %v1008_v40  ;;  %v1200_v34 = vmul.f32 0.5, %v1008_v40  ;;  %v1074_v55 = vand.u32 2147483647, %v1010_v14 }
 0x29b   : > { %v1412_v58 = vadd.f32 %v1391_v37, %v1390_v7  ;;  %v1389_v30 = vsel %vm1133_vm10, %v1261_v50, %v1713_v42  ;;  %v1202_v19 = vmul.f32 0.5, %v1010_v14  ;;  %v1075_v41 = vand.u32 2147483647, %v1011_v61 }
 0x29c   : > { %v1443_v17 = vadd.f32 %v1427_v59, %v1389_v30  ;;  %vm1136_vm11 = vcmp.lt.f32.partialorder %v1072_v29, 1.0  ;;  %v1264_v28 = vmul.f32 %v1200_v34, %v1008_v40  ;;  %v1716_v15 = vadd.f32 -0.5, %v1072_v29 }
 0x29d   : > { %vm2714_vm12 = vcmp.lt.f32.partialorder %v1074_v55, 1.0  ;;  %v1266_v38 = vmul.f32 %v1202_v19, %v1010_v14  ;;  %v1718_v27 = vadd.f32 -0.5, %v1074_v55  ;;  %v1203_v11 = vmul.f32 0.5, %v1011_v61 }
 0x29e   : > { %v1458_v4 = vadd.f32 %v1457_v44, %v1443_v17  ;;  %v1392_v5 = vsel %vm1136_vm11, %v1264_v28, %v1716_v15  ;;  %v1719_v21 = vadd.f32 -0.5, %v1075_v41  ;;  %vm1139_vm13 = vcmp.lt.f32.partialorder %v1075_v41, 1.0 }
 0x29f   : > { %v1428_v12 = vadd.f32 %v1412_v58, %v1392_v5  ;;  %v1073_v1 = vand.u32 2147483647, %v1009_v46  ;;  %v1201_v13 = vmul.f32 0.5, %v1009_v46  ;;  %v1394_v16 = vsel %vm2714_vm12, %v1266_v38, %v1718_v27 }
 0x2a0   : > { %v1267_v23 = vmul.f32 %v1203_v11, %v1011_v61  ;;  %v1012_v3 = vsub.f32 %v2568_v2, %v948_v63  ;;  %v1013_v31 = vsub.f32 %v2572_v36, %v949_v0 }
 0x2a1   : > { %vm1137_vm14 = vcmp.lt.f32.partialorder %v1073_v1, 1.0  ;;  %v1265_v32 = vmul.f32 %v1201_v13, %v1009_v46  ;;  %v1717_v6 = vadd.f32 -0.5, %v1073_v1 }
 0x2a2   : > { %v1395_v39 = vsel %vm1139_vm13, %v1267_v23, %v1719_v21  ;;  %v1076_v25 = vand.u32 2147483647, %v1012_v3  ;;  %v1204_v43 = vmul.f32 0.5, %v1012_v3  ;;  %v1077_v35 = vand.u32 2147483647, %v1013_v31 }
 0x2a3   : > { %v1413_v52 = vadd.f32 %v1395_v39, %v1394_v16  ;;  %v1393_v49 = vsel %vm1137_vm14, %v1265_v32, %v1717_v6  ;;  %v1205_v54 = vmul.f32 0.5, %v1013_v31 }
 0x2a4   : > { %v1444_v18 = vadd.f32 %v1428_v12, %v1393_v49  ;;  %vm1140_vm15 = vcmp.lt.f32.partialorder %v1076_v25, 1.0  ;;  %v1268_v51 = vmul.f32 %v1204_v43, %v1012_v3  ;;  %v1720_v9 = vadd.f32 -0.5, %v1076_v25 }
 0x2a5   : > { %vm1141_vm0 = vcmp.lt.f32.partialorder %v1077_v35, 1.0  ;;  %v1269_v2 = vmul.f32 %v1205_v54, %v1013_v31  ;;  %v1721_v45 = vadd.f32 -0.5, %v1077_v35 }
 0x2a6   : > { %v1459_v36 = vadd.f32 %v1458_v4, %v1444_v18  ;;  %v1396_v48 = vsel %vm1140_vm15, %v1268_v51, %v1720_v9 }
 0x2a7   : > { %v1429_v47 = vadd.f32 %v1413_v52, %v1396_v48  ;;  %v1397_v56 = vsel %vm1141_vm0, %v1269_v2, %v1721_v45 }
 0x2a9   : > { %v1445_v22 = vadd.f32 %v1429_v47, %v1397_v56 }
 0x2ab   : > { %v1460_v33 = vadd.f32 %v1459_v36, %v1445_v22 }
 0x2ad   : > { %v1462_v44 = vadd.f32 %v1461_v57, %v1460_v33 }
 0x2af   : > { %1463 = vst [vmem:[%s2173_s11] sm:$0xff] %v1462_v44 }
 0x2b0 PF: > { %s18_s22 = sadd.s32 1, %s1956_s22   ;;  %s2858_s14 = sld [smem:[#allocation8_spill]] }
 0x2b1   : > { %p15_p8 = scmp.ge.s32.totalorder %s18_s22, 10   ;;  %s2859_s15 = smov %s1932_s16 }
 0x2b2   : > { %s2860_s16 = smov %s1936_s17  ;;  %s2861_s17 = smov %s2096_s12 }
 0x2b3   : > { %s2862_s18 = smov %s1948_s20  ;;  %s2863_s19 = smov %s1952_s21 }
 0x2b4   : > { %s2865_s21 = smov %s2871_s27  ;;  %17 = sbr.rel (!%p15_p8) target bundleno = 9 (0x9), region = 91 }
 0x2b6   : > { %s2864_s20 = smov %s2858_s14 }
 0x2bb   :  { %1489 = vsyncpa [#allocation3], 1 }
 0x2bc   :  { %1491 = vsyncpa [#allocation3 + $0x1], 1 }
 0x2bd   :  { %1492 = vsyncpa [#allocation5], 1 }
 0x2be   :  { %1494 = vsyncpa [#allocation5 + $0x1], 1 }

</bundles_post_ra>
